<compile_context>
chip_gen: v5e
topology: v5e:2x2
jax: 0.10.0
libtpu: 0.0.40
codegen_flags: <defaults>
</compile_context>

<pallas_src>
import functools

import jax
import jax.numpy as jnp
from jax import lax
from jax.experimental import pallas as pl
from jax.experimental.pallas import tpu as pltpu


def _round_up(n, m):
    return ((n + m - 1) // m) * m


def _physical_vmem_bytes():
    """Per-TensorCore physical VMEM of the current generation (best effort)."""
    try:
        info = pltpu.get_tpu_info()
        cap = getattr(info, "vmem_capacity_bytes", None)
        if cap:
            return int(cap)
    except Exception:
        pass
    return 64 << 20  # conservative default (v7x has 64 MiB / TensorCore)


# ---------------------------------------------------------------------------
# Fused kernel: both branches of  y = LayerNorm(x @ W^T + b + residual)
# ---------------------------------------------------------------------------
def _fused_dense_add_ln_kernel(
        # scalar-prefetch (SMEM) refs
        branch_ref, tok_blk_ref, ent_blk_ref,
        # tensor inputs (VMEM)
        xt_ref, xe_ref, rt_ref, re_ref, w_ref, p_ref,
        # output
        o_ref,
        *, eps, ent_param_idx):
    del tok_blk_ref, ent_blk_ref          # consumed by the index_maps only
    j = pl.program_id(1)
    br = branch_ref[j]                    # 0 = token branch, 1 = entity branch

    def run_branch(x_ref, r_ref, k):
        # k is a Python int -> static slice into the resident parameter stacks.
        x = x_ref[0]                                   # (ts, H), input dtype
        res = r_ref[0].astype(jnp.float32)             # (ts, H) f32
        w = w_ref[k]                                   # (H, H) bf16, = W^T
        p = p_ref[k].astype(jnp.float32)               # (3, H): bias, gamma, beta

        # bf16 MXU matmul with f32 accumulation; epilogue math in f32.
        y = jnp.dot(x.astype(jnp.bfloat16), w,
                    preferred_element_type=jnp.float32)
        y = y + p[0:1, :] + res

        # Two-pass LayerNorm statistics (no E[y^2]-mean^2 cancellation).
        mean = jnp.mean(y, axis=-1, keepdims=True)
        d = y - mean
        var = jnp.mean(d * d, axis=-1, keepdims=True)
        out = d * lax.rsqrt(var + eps) * p[1:2, :] + p[2:3, :]
        o_ref[0] = out.astype(o_ref.dtype)

    @pl.when(br == 0)
    def _():
        run_branch(xt_ref, rt_ref, 0)

    @pl.when(br != 0)
    def _():
        run_branch(xe_ref, re_ref, ent_param_idx)


# ---------------------------------------------------------------------------
# Host wrapper: padding, block schedule, pallas_call
# ---------------------------------------------------------------------------
def entity_aware_self_output(
        token_self_output, entity_self_output,
        token_hidden_states, entity_hidden_states,
        w_stacked, p_stacked,
        *, eps, seq_tile=512):
    """w_stacked: (n, H, H) bf16 (per-branch W^T); p_stacked: (n, 3, H) f32
    with rows [bias, ln_gamma, ln_beta].  n == 1 => entity branch shares the
    token parameters (entity_aware_selfout=False)."""
    B, S_tok, H = token_self_output.shape
    Be, S_ent, He = entity_self_output.shape
    assert (B, H) == (Be, He)
    n_param = w_stacked.shape[0]
    ent_param_idx = n_param - 1           # 0 when shared, 1 when entity-aware
    out_dtype = token_self_output.dtype

    # --- VMEM working-set estimate and generation-aware tile sizing --------
    act_itemsize = max(jnp.dtype(out_dtype).itemsize,
                       jnp.dtype(token_hidden_states.dtype).itemsize)
    # Conservative (assumes double-buffered resident params in the fallback).
    w_bytes = 2 * n_param * H * H * 2
    p_bytes = 2 * n_param * 8 * H * 4

    def _budget(ts_):
        act = 5 * 2 * ts_ * H * act_itemsize   # 4 inputs + 1 output, 2 buffers
        return act + w_bytes + p_bytes + (4 << 20)

    phys_cap = (_physical_vmem_bytes() * 9) // 10
    ts = min(int(seq_tile), _round_up(max(S_tok, S_ent), 8))
    while ts > 8 and _budget(ts) > phys_cap:
        ts = max(8, _round_up(ts // 2, 8))
    vmem_limit = int(min(max(_budget(ts), 16 << 20), phys_cap))

    S_tok_p = _round_up(S_tok, ts)
    S_ent_p = _round_up(S_ent, ts)
    nb_tok = S_tok_p // ts
    nb_ent = S_ent_p // ts
    nb = nb_tok + nb_ent

    def pad_seq(a, s_p):
        return a if a.shape[1] == s_p else jnp.pad(
            a, ((0, 0), (0, s_p - a.shape[1]), (0, 0)))

    xt = pad_seq(token_self_output, S_tok_p)
    rt = pad_seq(token_hidden_states, S_tok_p)
    xe = pad_seq(entity_self_output, S_ent_p)
    re_ = pad_seq(entity_hidden_states, S_ent_p)

    # Per-seq-block schedule (scalar-prefetched into SMEM).  The inactive
    # branch's source block index holds its last value so its tile is not
    # re-DMA'd while the other branch runs.
    branch_ids = jnp.concatenate([
        jnp.zeros((nb_tok,), jnp.int32), jnp.ones((nb_ent,), jnp.int32)])
    tok_blk = jnp.concatenate([
        jnp.arange(nb_tok, dtype=jnp.int32),
        jnp.full((nb_ent,), max(nb_tok - 1, 0), jnp.int32)])
    ent_blk = jnp.concatenate([
        jnp.zeros((nb_tok,), jnp.int32),
        jnp.arange(nb_ent, dtype=jnp.int32)])

    kernel = functools.partial(_fused_dense_add_ln_kernel,
                               eps=eps, ent_param_idx=ent_param_idx)

    def run(resident_kwargs):
        grid_spec = pltpu.PrefetchScalarGridSpec(
            num_scalar_prefetch=3,
            grid=(B, nb),
            in_specs=[
                pl.BlockSpec((1, ts, H), lambda b, j, br, tb, eb: (b, tb[j], 0)),  # token x
                pl.BlockSpec((1, ts, H), lambda b, j, br, tb, eb: (b, eb[j], 0)),  # entity x
                pl.BlockSpec((1, ts, H), lambda b, j, br, tb, eb: (b, tb[j], 0)),  # token residual
                pl.BlockSpec((1, ts, H), lambda b, j, br, tb, eb: (b, eb[j], 0)),  # entity residual
                pl.BlockSpec((n_param, H, H),                                      # stacked W^T (resident)
                             lambda b, j, br, tb, eb: (0, 0, 0), **resident_kwargs),
                pl.BlockSpec((n_param, 3, H),                                      # fused bias/gamma/beta
                             lambda b, j, br, tb, eb: (0, 0, 0), **resident_kwargs),
            ],
            out_specs=pl.BlockSpec((1, ts, H),
                                   lambda b, j, br, tb, eb: (b, j, 0)),
        )
        return pl.pallas_call(
            kernel,
            out_shape=jax.ShapeDtypeStruct((B, S_tok_p + S_ent_p, H), out_dtype),
            grid_spec=grid_spec,
            compiler_params=pltpu.CompilerParams(
                dimension_semantics=("parallel", "parallel"),
                vmem_limit_bytes=vmem_limit),
        )(branch_ids, tok_blk, ent_blk, xt, xe, rt, re_, w_stacked, p_stacked)

    # Single-buffer the constant-index resident params when supported; fall
    # back to default (double-buffered) pipelining otherwise.
    resident_kwargs = (
        {"pipeline_mode": pl.Buffered(1)} if hasattr(pl, "Buffered") else {})
    try:
        out_padded = run(resident_kwargs)
    except Exception:
        if not resident_kwargs:
            raise
        out_padded = run({})

    # Strip sequence padding.  When both lengths are tile aligned, the kernel
    # output is already the concatenated layout.
    if S_tok_p == S_tok and S_ent_p == S_ent:
        return out_padded
    if S_tok_p == S_tok:
        return out_padded[:, :S_tok + S_ent]
    return jnp.concatenate(
        [out_padded[:, :S_tok], out_padded[:, S_tok_p:S_tok_p + S_ent]], axis=1)


# ---------------------------------------------------------------------------
# Module wrapper
# ---------------------------------------------------------------------------
class EntityAwareBertSelfOutputPallas:
    def __init__(self, hidden_size, layer_norm_eps, entity_aware_selfout,
                 hidden_dropout_prob, key, seq_tile=512):
        self.hidden_size = hidden_size
        self.eps = layer_norm_eps
        self.entity_aware_selfout = entity_aware_selfout
        self.seq_tile = seq_tile
        # dropout is identity at inference time (hidden_dropout_prob unused).
        H = hidden_size
        k = jax.random.split(key, 8)
        scale = 1.0 / jnp.sqrt(H)
        # nn.Linear stores W as (out, in); we keep W^T = (in, out) for the kernel.
        w_tok_t = jax.random.normal(k[0], (H, H), jnp.float32) * scale
        b_tok = jax.random.normal(k[1], (H,), jnp.float32) * scale
        g_tok = 1.0 + 0.1 * jax.random.normal(k[2], (H,), jnp.float32)
        be_tok = 0.1 * jax.random.normal(k[3], (H,), jnp.float32)
        w_list = [w_tok_t]
        p_list = [jnp.stack([b_tok, g_tok, be_tok])]
        if entity_aware_selfout:
            w_ent_t = jax.random.normal(k[4], (H, H), jnp.float32) * scale
            b_ent = jax.random.normal(k[5], (H,), jnp.float32) * scale
            g_ent = 1.0 + 0.1 * jax.random.normal(k[6], (H,), jnp.float32)
            be_ent = 0.1 * jax.random.normal(k[7], (H,), jnp.float32)
            w_list.append(w_ent_t)
            p_list.append(jnp.stack([b_ent, g_ent, be_ent]))
        # Stacked params: weights in bf16 (MXU operands), the rest in f32.
        self.w = jnp.stack(w_list).astype(jnp.bfloat16)   # (n, H, H)
        self.p = jnp.stack(p_list)                         # (n, 3, H) f32

    def __call__(self, token_self_output, entity_self_output,
                 token_hidden_states, entity_hidden_states):
        return entity_aware_self_output(
            token_self_output, entity_self_output,
            token_hidden_states, entity_hidden_states,
            self.w, self.p, eps=self.eps, seq_tile=self.seq_tile)


# ---------------------------------------------------------------------------
# Pure-JAX reference (bf16 matmul operands, f32 two-pass LayerNorm)
# ---------------------------------------------------------------------------
def _ref_forward(mod, tso, eso, ths, ehs):
    w = mod.w.astype(jnp.float32)      # bf16-rounded values
    p = mod.p
    n = w.shape[0]

    def branch(x, res, k):
        y = (x.astype(jnp.bfloat16).astype(jnp.float32) @ w[k]
             + p[k, 0] + res.astype(jnp.float32))
        mean = jnp.mean(y, -1, keepdims=True)
        var = jnp.mean((y - mean) ** 2, -1, keepdims=True)
        return (y - mean) * lax.rsqrt(var + mod.eps) * p[k, 1] + p[k, 2]

    tok = branch(tso, ths, 0)
    ent = branch(eso, ehs, n - 1)
    return jnp.concatenate([tok, ent], axis=1)


if __name__ == "__main__":
    B, S_TOK, S_ENT, H = 2, 8, 4, 32

    key = jax.random.PRNGKey(0)
    k_mod, k1, k2, k3, k4 = jax.random.split(key, 5)

    module = EntityAwareBertSelfOutputPallas(
        hidden_size=H, layer_norm_eps=1e-12,
        entity_aware_selfout=True, hidden_dropout_prob=0.1, key=k_mod)

    tso = jax.random.normal(k1, (B, S_TOK, H), jnp.float32)
    eso = jax.random.normal(k2, (B, S_ENT, H), jnp.float32)
    ths = jax.random.normal(k3, (B, S_TOK, H), jnp.float32)
    ehs = jax.random.normal(k4, (B, S_ENT, H), jnp.float32)

    out = jax.block_until_ready(module(tso, eso, ths, ehs))
    ref = _ref_forward(module, tso, eso, ths, ehs)
    assert out.shape == (B, S_TOK + S_ENT, H), out.shape
    assert jnp.allclose(out, ref, atol=1e-3, rtol=1e-3), "mismatch vs reference"

    # Non-tile-aligned sequence lengths (exercises padding + slice/concat path).
    tso2 = jax.random.normal(k1, (B, 7, H), jnp.float32)
    eso2 = jax.random.normal(k2, (B, 5, H), jnp.float32)
    ths2 = jax.random.normal(k3, (B, 7, H), jnp.float32)
    ehs2 = jax.random.normal(k4, (B, 5, H), jnp.float32)
    out2 = jax.block_until_ready(module(tso2, eso2, ths2, ehs2))
    ref2 = _ref_forward(module, tso2, eso2, ths2, ehs2)
    assert out2.shape == (B, 12, H), out2.shape
    assert jnp.allclose(out2, ref2, atol=1e-3, rtol=1e-3), "mismatch (ragged)"

    # Both branches tile aligned (pure concatenated-layout output, no slicing).
    eso3 = jax.random.normal(k2, (B, 8, H), jnp.float32)
    ehs3 = jax.random.normal(k4, (B, 8, H), jnp.float32)
    out3 = jax.block_until_ready(module(tso, eso3, ths, ehs3))
    ref3 = _ref_forward(module, tso, eso3, ths, ehs3)
    assert jnp.allclose(out3, ref3, atol=1e-3, rtol=1e-3), "mismatch (aligned)"

    # entity_aware_selfout=False path (entity branch reuses token weights; n=1).
    module2 = EntityAwareBertSelfOutputPallas(
        hidden_size=H, layer_norm_eps=1e-12,
        entity_aware_selfout=False, hidden_dropout_prob=0.1, key=k_mod)
    out4 = jax.block_until_ready(module2(tso, eso, ths, ehs))
    ref4 = _ref_forward(module2, tso, eso, ths, ehs)
    assert jnp.allclose(out4, ref4, atol=1e-3, rtol=1e-3), "mismatch (shared)"

    # bf16 activations in -> bf16 output (HBM-bandwidth optimization path).
    tso_b, eso_b = tso.astype(jnp.bfloat16), eso.astype(jnp.bfloat16)
    ths_b, ehs_b = ths.astype(jnp.bfloat16), ehs.astype(jnp.bfloat16)
    out5 = jax.block_until_ready(module(tso_b, eso_b, ths_b, ehs_b))
    ref5 = _ref_forward(module, tso_b, eso_b, ths_b, ehs_b)
    assert out5.dtype == jnp.bfloat16, out5.dtype
    assert jnp.allclose(out5.astype(jnp.float32), ref5, atol=5e-2, rtol=5e-2), \
        "mismatch (bf16)"

    print("KERNEL_OK")
</pallas_src>

<mosaic_0001>
module attributes {stable_mosaic.version = 11 : i64} {
  func.func @_fused_dense_add_ln_kernel(%arg0: i32, %arg1: i32, %arg2: memref<2xi32, #tpu.memory_space<smem>>, %arg3: memref<2xi32, #tpu.memory_space<smem>>, %arg4: memref<2xi32, #tpu.memory_space<smem>>, %arg5: memref<1x8x32xf32, #tpu.memory_space<vmem>>, %arg6: memref<1x8x32xf32, #tpu.memory_space<vmem>>, %arg7: memref<1x8x32xf32, #tpu.memory_space<vmem>>, %arg8: memref<1x8x32xf32, #tpu.memory_space<vmem>>, %arg9: memref<2x32x32xbf16, #tpu.memory_space<vmem>>, %arg10: memref<2x3x32xf32, #tpu.memory_space<vmem>>, %arg11: memref<1x8x32xf32, #tpu.memory_space<vmem>>) attributes {dimension_semantics = [#tpu.dimension_semantics<parallel>, #tpu.dimension_semantics<parallel>], iteration_bounds = array<i64: 2, 2>, scalar_prefetch = 3 : i64, scratch_operands = 0 : i64, tpu.core_type = #tpu.core_type<tc>, window_params = [{transform_indices = @transform_0, window_bounds = array<i64: 1, 8, 32>}, {transform_indices = @transform_1, window_bounds = array<i64: 1, 8, 32>}, {transform_indices = @transform_2, window_bounds = array<i64: 1, 8, 32>}, {transform_indices = @transform_3, window_bounds = array<i64: 1, 8, 32>}, {pipeline_mode = #tpu.pipeline_mode<synchronous>, transform_indices = @transform_4, window_bounds = array<i64: 2, 32, 32>}, {pipeline_mode = #tpu.pipeline_mode<synchronous>, transform_indices = @transform_5, window_bounds = array<i64: 2, 3, 32>}, {transform_indices = @transform_6, window_bounds = array<i64: 1, 8, 32>}]} {
    %0 = arith.index_cast %arg1 : i32 to index
    %1 = memref.load %arg2[%0] : memref<2xi32, #tpu.memory_space<smem>>
    %c0_i32 = arith.constant 0 : i32
    %2 = arith.cmpi eq, %1, %c0_i32 : i32
    %3 = arith.extui %2 : i1 to i32
    %c0_i32_0 = arith.constant 0 : i32
    %4 = arith.cmpi ne, %3, %c0_i32_0 : i32
    scf.if %4 {
      %c0 = arith.constant 0 : index
      %c0_3 = arith.constant 0 : index
      %c0_4 = arith.constant 0 : index
      %8 = vector.load %arg5[%c0, %c0_3, %c0_4] : memref<1x8x32xf32, #tpu.memory_space<vmem>>, vector<1x8x32xf32>
      %9 = vector.shape_cast %8 : vector<1x8x32xf32> to vector<8x32xf32>
      %c0_5 = arith.constant 0 : index
      %c0_6 = arith.constant 0 : index
      %c0_7 = arith.constant 0 : index
      %10 = vector.load %arg7[%c0_5, %c0_6, %c0_7] : memref<1x8x32xf32, #tpu.memory_space<vmem>>, vector<1x8x32xf32>
      %11 = vector.shape_cast %10 : vector<1x8x32xf32> to vector<8x32xf32>
      %c0_8 = arith.constant 0 : index
      %c0_9 = arith.constant 0 : index
      %c0_10 = arith.constant 0 : index
      %12 = vector.load %arg9[%c0_8, %c0_9, %c0_10] : memref<2x32x32xbf16, #tpu.memory_space<vmem>>, vector<1x32x32xbf16>
      %13 = vector.shape_cast %12 : vector<1x32x32xbf16> to vector<32x32xbf16>
      %c0_11 = arith.constant 0 : index
      %c0_12 = arith.constant 0 : index
      %c0_13 = arith.constant 0 : index
      %14 = vector.load %arg10[%c0_11, %c0_12, %c0_13] : memref<2x3x32xf32, #tpu.memory_space<vmem>>, vector<1x3x32xf32>
      %15 = vector.shape_cast %14 : vector<1x3x32xf32> to vector<3x32xf32>
      %16 = arith.truncf %9 : vector<8x32xf32> to vector<8x32xbf16>
      %cst = arith.constant dense<0.000000e+00> : vector<8x32xf32>
      %17 = tpu.matmul %16, %13, %cst {dimension_numbers = #tpu.dot_dimension_numbers<[1], [0], [0], [1], [0, 0, 1, 1], [], []>} : vector<8x32xbf16>, vector<32x32xbf16>, vector<8x32xf32> -> vector<8x32xf32>
      %18 = vector.extract_strided_slice %15 {offsets = [0, 0], sizes = [1, 32], strides = [1, 1]} : vector<3x32xf32> to vector<1x32xf32>
      %19 = vector.broadcast %18 : vector<1x32xf32> to vector<8x32xf32>
      %20 = arith.addf %17, %19 : vector<8x32xf32>
      %21 = arith.addf %20, %11 : vector<8x32xf32>
      %cst_14 = arith.constant dense<0.000000e+00> : vector<8xf32>
      %22 = vector.multi_reduction <add>, %21, %cst_14 [1] : vector<8x32xf32> to vector<8xf32>
      %23 = vector.shape_cast %22 : vector<8xf32> to vector<8x1xf32>
      %cst_15 = arith.constant 3.200000e+01 : f32
      %24 = vector.broadcast %cst_15 : f32 to vector<8x1xf32>
      %25 = arith.divf %23, %24 : vector<8x1xf32>
      %26 = vector.broadcast %25 : vector<8x1xf32> to vector<8x32xf32>
      %27 = arith.subf %21, %26 : vector<8x32xf32>
      %28 = arith.mulf %27, %27 : vector<8x32xf32>
      %cst_16 = arith.constant dense<0.000000e+00> : vector<8xf32>
      %29 = vector.multi_reduction <add>, %28, %cst_16 [1] : vector<8x32xf32> to vector<8xf32>
      %30 = vector.shape_cast %29 : vector<8xf32> to vector<8x1xf32>
      %cst_17 = arith.constant 3.200000e+01 : f32
      %31 = vector.broadcast %cst_17 : f32 to vector<8x1xf32>
      %32 = arith.divf %30, %31 : vector<8x1xf32>
      %cst_18 = arith.constant 9.99999996E-13 : f32
      %33 = vector.broadcast %cst_18 : f32 to vector<8x1xf32>
      %34 = arith.addf %32, %33 : vector<8x1xf32>
      %35 = math.rsqrt %34 : vector<8x1xf32>
      %36 = vector.broadcast %35 : vector<8x1xf32> to vector<8x32xf32>
      %37 = arith.mulf %27, %36 : vector<8x32xf32>
      %38 = vector.extract_strided_slice %15 {offsets = [1, 0], sizes = [1, 32], strides = [1, 1]} : vector<3x32xf32> to vector<1x32xf32>
      %39 = vector.broadcast %38 : vector<1x32xf32> to vector<8x32xf32>
      %40 = arith.mulf %37, %39 : vector<8x32xf32>
      %41 = vector.extract_strided_slice %15 {offsets = [2, 0], sizes = [1, 32], strides = [1, 1]} : vector<3x32xf32> to vector<1x32xf32>
      %42 = vector.broadcast %41 : vector<1x32xf32> to vector<8x32xf32>
      %43 = arith.addf %40, %42 : vector<8x32xf32>
      %c0_19 = arith.constant 0 : index
      %c0_20 = arith.constant 0 : index
      %c0_21 = arith.constant 0 : index
      %44 = vector.load %arg11[%c0_19, %c0_20, %c0_21] : memref<1x8x32xf32, #tpu.memory_space<vmem>>, vector<1x8x32xf32>
      %45 = vector.shape_cast %44 : vector<1x8x32xf32> to vector<8x32xf32>
      %46 = vector.shape_cast %43 : vector<8x32xf32> to vector<1x8x32xf32>
      tpu.vector_store %arg11[%c0_19, %c0_20, %c0_21], %46 {strides = array<i32>} : memref<1x8x32xf32, #tpu.memory_space<vmem>>, vector<1x8x32xf32>,
    } else {
    }
    %c0_i32_1 = arith.constant 0 : i32
    %5 = arith.cmpi ne, %1, %c0_i32_1 : i32
    %6 = arith.extui %5 : i1 to i32
    %c0_i32_2 = arith.constant 0 : i32
    %7 = arith.cmpi ne, %6, %c0_i32_2 : i32
    scf.if %7 {
      %c0 = arith.constant 0 : index
      %c0_3 = arith.constant 0 : index
      %c0_4 = arith.constant 0 : index
      %8 = vector.load %arg6[%c0, %c0_3, %c0_4] : memref<1x8x32xf32, #tpu.memory_space<vmem>>, vector<1x8x32xf32>
      %9 = vector.shape_cast %8 : vector<1x8x32xf32> to vector<8x32xf32>
      %c0_5 = arith.constant 0 : index
      %c0_6 = arith.constant 0 : index
      %c0_7 = arith.constant 0 : index
      %10 = vector.load %arg8[%c0_5, %c0_6, %c0_7] : memref<1x8x32xf32, #tpu.memory_space<vmem>>, vector<1x8x32xf32>
      %11 = vector.shape_cast %10 : vector<1x8x32xf32> to vector<8x32xf32>
      %c1 = arith.constant 1 : index
      %c0_8 = arith.constant 0 : index
      %c0_9 = arith.constant 0 : index
      %12 = vector.load %arg9[%c1, %c0_8, %c0_9] : memref<2x32x32xbf16, #tpu.memory_space<vmem>>, vector<1x32x32xbf16>
      %13 = vector.shape_cast %12 : vector<1x32x32xbf16> to vector<32x32xbf16>
      %c1_10 = arith.constant 1 : index
      %c0_11 = arith.constant 0 : index
      %c0_12 = arith.constant 0 : index
      %14 = vector.load %arg10[%c1_10, %c0_11, %c0_12] : memref<2x3x32xf32, #tpu.memory_space<vmem>>, vector<1x3x32xf32>
      %15 = vector.shape_cast %14 : vector<1x3x32xf32> to vector<3x32xf32>
      %16 = arith.truncf %9 : vector<8x32xf32> to vector<8x32xbf16>
      %cst = arith.constant dense<0.000000e+00> : vector<8x32xf32>
      %17 = tpu.matmul %16, %13, %cst {dimension_numbers = #tpu.dot_dimension_numbers<[1], [0], [0], [1], [0, 0, 1, 1], [], []>} : vector<8x32xbf16>, vector<32x32xbf16>, vector<8x32xf32> -> vector<8x32xf32>
      %18 = vector.extract_strided_slice %15 {offsets = [0, 0], sizes = [1, 32], strides = [1, 1]} : vector<3x32xf32> to vector<1x32xf32>
      %19 = vector.broadcast %18 : vector<1x32xf32> to vector<8x32xf32>
      %20 = arith.addf %17, %19 : vector<8x32xf32>
      %21 = arith.addf %20, %11 : vector<8x32xf32>
      %cst_13 = arith.constant dense<0.000000e+00> : vector<8xf32>
      %22 = vector.multi_reduction <add>, %21, %cst_13 [1] : vector<8x32xf32> to vector<8xf32>
      %23 = vector.shape_cast %22 : vector<8xf32> to vector<8x1xf32>
      %cst_14 = arith.constant 3.200000e+01 : f32
      %24 = vector.broadcast %cst_14 : f32 to vector<8x1xf32>
      %25 = arith.divf %23, %24 : vector<8x1xf32>
      %26 = vector.broadcast %25 : vector<8x1xf32> to vector<8x32xf32>
      %27 = arith.subf %21, %26 : vector<8x32xf32>
      %28 = arith.mulf %27, %27 : vector<8x32xf32>
      %cst_15 = arith.constant dense<0.000000e+00> : vector<8xf32>
      %29 = vector.multi_reduction <add>, %28, %cst_15 [1] : vector<8x32xf32> to vector<8xf32>
      %30 = vector.shape_cast %29 : vector<8xf32> to vector<8x1xf32>
      %cst_16 = arith.constant 3.200000e+01 : f32
      %31 = vector.broadcast %cst_16 : f32 to vector<8x1xf32>
      %32 = arith.divf %30, %31 : vector<8x1xf32>
      %cst_17 = arith.constant 9.99999996E-13 : f32
      %33 = vector.broadcast %cst_17 : f32 to vector<8x1xf32>
      %34 = arith.addf %32, %33 : vector<8x1xf32>
      %35 = math.rsqrt %34 : vector<8x1xf32>
      %36 = vector.broadcast %35 : vector<8x1xf32> to vector<8x32xf32>
      %37 = arith.mulf %27, %36 : vector<8x32xf32>
      %38 = vector.extract_strided_slice %15 {offsets = [1, 0], sizes = [1, 32], strides = [1, 1]} : vector<3x32xf32> to vector<1x32xf32>
      %39 = vector.broadcast %38 : vector<1x32xf32> to vector<8x32xf32>
      %40 = arith.mulf %37, %39 : vector<8x32xf32>
      %41 = vector.extract_strided_slice %15 {offsets = [2, 0], sizes = [1, 32], strides = [1, 1]} : vector<3x32xf32> to vector<1x32xf32>
      %42 = vector.broadcast %41 : vector<1x32xf32> to vector<8x32xf32>
      %43 = arith.addf %40, %42 : vector<8x32xf32>
      %c0_18 = arith.constant 0 : index
      %c0_19 = arith.constant 0 : index
      %c0_20 = arith.constant 0 : index
      %44 = vector.load %arg11[%c0_18, %c0_19, %c0_20] : memref<1x8x32xf32, #tpu.memory_space<vmem>>, vector<1x8x32xf32>
      %45 = vector.shape_cast %44 : vector<1x8x32xf32> to vector<8x32xf32>
      %46 = vector.shape_cast %43 : vector<8x32xf32> to vector<1x8x32xf32>
      tpu.vector_store %arg11[%c0_18, %c0_19, %c0_20], %46 {strides = array<i32>} : memref<1x8x32xf32, #tpu.memory_space<vmem>>, vector<1x8x32xf32>,
    } else {
    }
    return
  }
  func.func @transform_0(%arg0: i32, %arg1: i32, %arg2: memref<2xi32, #tpu.memory_space<smem>>, %arg3: memref<2xi32, #tpu.memory_space<smem>>, %arg4: memref<2xi32, #tpu.memory_space<smem>>) -> (i32, i32, i32) {
    %0 = arith.index_cast %arg1 : i32 to index
    %1 = memref.load %arg3[%0] : memref<2xi32, #tpu.memory_space<smem>>
    %c0_i32 = arith.constant 0 : i32
    %c0_i32_0 = arith.constant 0 : i32
    return %arg0, %1, %c0_i32 : i32, i32, i32
  }
  func.func @transform_1(%arg0: i32, %arg1: i32, %arg2: memref<2xi32, #tpu.memory_space<smem>>, %arg3: memref<2xi32, #tpu.memory_space<smem>>, %arg4: memref<2xi32, #tpu.memory_space<smem>>) -> (i32, i32, i32) {
    %0 = arith.index_cast %arg1 : i32 to index
    %1 = memref.load %arg4[%0] : memref<2xi32, #tpu.memory_space<smem>>
    %c0_i32 = arith.constant 0 : i32
    %c0_i32_0 = arith.constant 0 : i32
    return %arg0, %1, %c0_i32 : i32, i32, i32
  }
  func.func @transform_2(%arg0: i32, %arg1: i32, %arg2: memref<2xi32, #tpu.memory_space<smem>>, %arg3: memref<2xi32, #tpu.memory_space<smem>>, %arg4: memref<2xi32, #tpu.memory_space<smem>>) -> (i32, i32, i32) {
    %0 = arith.index_cast %arg1 : i32 to index
    %1 = memref.load %arg3[%0] : memref<2xi32, #tpu.memory_space<smem>>
    %c0_i32 = arith.constant 0 : i32
    %c0_i32_0 = arith.constant 0 : i32
    return %arg0, %1, %c0_i32 : i32, i32, i32
  }
  func.func @transform_3(%arg0: i32, %arg1: i32, %arg2: memref<2xi32, #tpu.memory_space<smem>>, %arg3: memref<2xi32, #tpu.memory_space<smem>>, %arg4: memref<2xi32, #tpu.memory_space<smem>>) -> (i32, i32, i32) {
    %0 = arith.index_cast %arg1 : i32 to index
    %1 = memref.load %arg4[%0] : memref<2xi32, #tpu.memory_space<smem>>
    %c0_i32 = arith.constant 0 : i32
    %c0_i32_0 = arith.constant 0 : i32
    return %arg0, %1, %c0_i32 : i32, i32, i32
  }
  func.func @transform_4(%arg0: i32, %arg1: i32, %arg2: memref<2xi32, #tpu.memory_space<smem>>, %arg3: memref<2xi32, #tpu.memory_space<smem>>, %arg4: memref<2xi32, #tpu.memory_space<smem>>) -> (i32, i32, i32) {
    %c0_i32 = arith.constant 0 : i32
    %c0_i32_0 = arith.constant 0 : i32
    %c0_i32_1 = arith.constant 0 : i32
    %c0_i32_2 = arith.constant 0 : i32
    return %c0_i32, %c0_i32_0, %c0_i32_1 : i32, i32, i32
  }
  func.func @transform_5(%arg0: i32, %arg1: i32, %arg2: memref<2xi32, #tpu.memory_space<smem>>, %arg3: memref<2xi32, #tpu.memory_space<smem>>, %arg4: memref<2xi32, #tpu.memory_space<smem>>) -> (i32, i32, i32) {
    %c0_i32 = arith.constant 0 : i32
    %c0_i32_0 = arith.constant 0 : i32
    %c0_i32_1 = arith.constant 0 : i32
    %c0_i32_2 = arith.constant 0 : i32
    return %c0_i32, %c0_i32_0, %c0_i32_1 : i32, i32, i32
  }
  func.func @transform_6(%arg0: i32, %arg1: i32, %arg2: memref<2xi32, #tpu.memory_space<smem>>, %arg3: memref<2xi32, #tpu.memory_space<smem>>, %arg4: memref<2xi32, #tpu.memory_space<smem>>) -> (i32, i32, i32) {
    %c0_i32 = arith.constant 0 : i32
    %c0_i32_0 = arith.constant 0 : i32
    return %arg0, %arg1, %c0_i32 : i32, i32, i32
  }
}

module attributes {stable_mosaic.version = 11 : i64} {
  func.func @_fused_dense_add_ln_kernel(%arg0: i32, %arg1: i32, %arg2: memref<2xi32, #tpu.memory_space<smem>>, %arg3: memref<2xi32, #tpu.memory_space<smem>>, %arg4: memref<2xi32, #tpu.memory_space<smem>>, %arg5: memref<1x8x32xf32, #tpu.memory_space<vmem>>, %arg6: memref<1x8x32xf32, #tpu.memory_space<vmem>>, %arg7: memref<1x8x32xf32, #tpu.memory_space<vmem>>, %arg8: memref<1x8x32xf32, #tpu.memory_space<vmem>>, %arg9: memref<2x32x32xbf16, #tpu.memory_space<vmem>>, %arg10: memref<2x3x32xf32, #tpu.memory_space<vmem>>, %arg11: memref<1x8x32xf32, #tpu.memory_space<vmem>>) attributes {dimension_semantics = [#tpu.dimension_semantics<parallel>, #tpu.dimension_semantics<parallel>], iteration_bounds = array<i64: 2, 2>, scalar_prefetch = 3 : i64, scratch_operands = 0 : i64, tpu.core_type = #tpu.core_type<tc>, window_params = [{transform_indices = @transform_0, window_bounds = array<i64: 1, 8, 32>}, {transform_indices = @transform_1, window_bounds = array<i64: 1, 8, 32>}, {transform_indices = @transform_2, window_bounds = array<i64: 1, 8, 32>}, {transform_indices = @transform_3, window_bounds = array<i64: 1, 8, 32>}, {pipeline_mode = #tpu.pipeline_mode<synchronous>, transform_indices = @transform_4, window_bounds = array<i64: 2, 32, 32>}, {pipeline_mode = #tpu.pipeline_mode<synchronous>, transform_indices = @transform_5, window_bounds = array<i64: 2, 3, 32>}, {transform_indices = @transform_6, window_bounds = array<i64: 1, 8, 32>}]} {
    %0 = arith.index_cast %arg1 : i32 to index
    %1 = memref.load %arg2[%0] : memref<2xi32, #tpu.memory_space<smem>>
    %c0_i32 = arith.constant 0 : i32
    %2 = arith.cmpi eq, %1, %c0_i32 : i32
    %3 = arith.extui %2 : i1 to i32
    %c0_i32_0 = arith.constant 0 : i32
    %4 = arith.cmpi ne, %3, %c0_i32_0 : i32
    scf.if %4 {
      %c0 = arith.constant 0 : index
      %c0_3 = arith.constant 0 : index
      %c0_4 = arith.constant 0 : index
      %8 = vector.load %arg5[%c0, %c0_3, %c0_4] : memref<1x8x32xf32, #tpu.memory_space<vmem>>, vector<1x8x32xf32>
      %9 = vector.shape_cast %8 : vector<1x8x32xf32> to vector<8x32xf32>
      %c0_5 = arith.constant 0 : index
      %c0_6 = arith.constant 0 : index
      %c0_7 = arith.constant 0 : index
      %10 = vector.load %arg7[%c0_5, %c0_6, %c0_7] : memref<1x8x32xf32, #tpu.memory_space<vmem>>, vector<1x8x32xf32>
      %11 = vector.shape_cast %10 : vector<1x8x32xf32> to vector<8x32xf32>
      %c0_8 = arith.constant 0 : index
      %c0_9 = arith.constant 0 : index
      %c0_10 = arith.constant 0 : index
      %12 = vector.load %arg9[%c0_8, %c0_9, %c0_10] : memref<2x32x32xbf16, #tpu.memory_space<vmem>>, vector<1x32x32xbf16>
      %13 = vector.shape_cast %12 : vector<1x32x32xbf16> to vector<32x32xbf16>
      %c0_11 = arith.constant 0 : index
      %c0_12 = arith.constant 0 : index
      %c0_13 = arith.constant 0 : index
      %14 = vector.load %arg10[%c0_11, %c0_12, %c0_13] : memref<2x3x32xf32, #tpu.memory_space<vmem>>, vector<1x3x32xf32>
      %15 = vector.shape_cast %14 : vector<1x3x32xf32> to vector<3x32xf32>
      %16 = arith.truncf %9 : vector<8x32xf32> to vector<8x32xbf16>
      %cst = arith.constant dense<0.000000e+00> : vector<8x32xf32>
      %17 = tpu.matmul %16, %13, %cst {dimension_numbers = #tpu.dot_dimension_numbers<[1], [0], [0], [1], [0, 0, 1, 1], [], []>} : vector<8x32xbf16>, vector<32x32xbf16>, vector<8x32xf32> -> vector<8x32xf32>
      %18 = vector.extract_strided_slice %15 {offsets = [0, 0], sizes = [1, 32], strides = [1, 1]} : vector<3x32xf32> to vector<1x32xf32>
      %19 = vector.broadcast %18 : vector<1x32xf32> to vector<8x32xf32>
      %20 = arith.addf %17, %19 : vector<8x32xf32>
      %21 = arith.addf %20, %11 : vector<8x32xf32>
      %cst_14 = arith.constant dense<0.000000e+00> : vector<8xf32>
      %22 = vector.multi_reduction <add>, %21, %cst_14 [1] : vector<8x32xf32> to vector<8xf32>
      %23 = vector.shape_cast %22 : vector<8xf32> to vector<8x1xf32>
      %cst_15 = arith.constant 3.200000e+01 : f32
      %24 = vector.broadcast %cst_15 : f32 to vector<8x1xf32>
      %25 = arith.divf %23, %24 : vector<8x1xf32>
      %26 = vector.broadcast %25 : vector<8x1xf32> to vector<8x32xf32>
      %27 = arith.subf %21, %26 : vector<8x32xf32>
      %28 = arith.mulf %27, %27 : vector<8x32xf32>
      %cst_16 = arith.constant dense<0.000000e+00> : vector<8xf32>
      %29 = vector.multi_reduction <add>, %28, %cst_16 [1] : vector<8x32xf32> to vector<8xf32>
      %30 = vector.shape_cast %29 : vector<8xf32> to vector<8x1xf32>
      %cst_17 = arith.constant 3.200000e+01 : f32
      %31 = vector.broadcast %cst_17 : f32 to vector<8x1xf32>
      %32 = arith.divf %30, %31 : vector<8x1xf32>
      %cst_18 = arith.constant 9.99999996E-13 : f32
      %33 = vector.broadcast %cst_18 : f32 to vector<8x1xf32>
      %34 = arith.addf %32, %33 : vector<8x1xf32>
      %35 = math.rsqrt %34 : vector<8x1xf32>
      %36 = vector.broadcast %35 : vector<8x1xf32> to vector<8x32xf32>
      %37 = arith.mulf %27, %36 : vector<8x32xf32>
      %38 = vector.extract_strided_slice %15 {offsets = [1, 0], sizes = [1, 32], strides = [1, 1]} : vector<3x32xf32> to vector<1x32xf32>
      %39 = vector.broadcast %38 : vector<1x32xf32> to vector<8x32xf32>
      %40 = arith.mulf %37, %39 : vector<8x32xf32>
      %41 = vector.extract_strided_slice %15 {offsets = [2, 0], sizes = [1, 32], strides = [1, 1]} : vector<3x32xf32> to vector<1x32xf32>
      %42 = vector.broadcast %41 : vector<1x32xf32> to vector<8x32xf32>
      %43 = arith.addf %40, %42 : vector<8x32xf32>
      %c0_19 = arith.constant 0 : index
      %c0_20 = arith.constant 0 : index
      %c0_21 = arith.constant 0 : index
      %44 = vector.load %arg11[%c0_19, %c0_20, %c0_21] : memref<1x8x32xf32, #tpu.memory_space<vmem>>, vector<1x8x32xf32>
      %45 = vector.shape_cast %44 : vector<1x8x32xf32> to vector<8x32xf32>
      %46 = vector.shape_cast %43 : vector<8x32xf32> to vector<1x8x32xf32>
      tpu.vector_store %arg11[%c0_19, %c0_20, %c0_21], %46 {strides = array<i32>} : memref<1x8x32xf32, #tpu.memory_space<vmem>>, vector<1x8x32xf32>,
    } else {
    }
    %c0_i32_1 = arith.constant 0 : i32
    %5 = arith.cmpi ne, %1, %c0_i32_1 : i32
    %6 = arith.extui %5 : i1 to i32
    %c0_i32_2 = arith.constant 0 : i32
    %7 = arith.cmpi ne, %6, %c0_i32_2 : i32
    scf.if %7 {
      %c0 = arith.constant 0 : index
      %c0_3 = arith.constant 0 : index
      %c0_4 = arith.constant 0 : index
      %8 = vector.load %arg6[%c0, %c0_3, %c0_4] : memref<1x8x32xf32, #tpu.memory_space<vmem>>, vector<1x8x32xf32>
      %9 = vector.shape_cast %8 : vector<1x8x32xf32> to vector<8x32xf32>
      %c0_5 = arith.constant 0 : index
      %c0_6 = arith.constant 0 : index
      %c0_7 = arith.constant 0 : index
      %10 = vector.load %arg8[%c0_5, %c0_6, %c0_7] : memref<1x8x32xf32, #tpu.memory_space<vmem>>, vector<1x8x32xf32>
      %11 = vector.shape_cast %10 : vector<1x8x32xf32> to vector<8x32xf32>
      %c1 = arith.constant 1 : index
      %c0_8 = arith.constant 0 : index
      %c0_9 = arith.constant 0 : index
      %12 = vector.load %arg9[%c1, %c0_8, %c0_9] : memref<2x32x32xbf16, #tpu.memory_space<vmem>>, vector<1x32x32xbf16>
      %13 = vector.shape_cast %12 : vector<1x32x32xbf16> to vector<32x32xbf16>
      %c1_10 = arith.constant 1 : index
      %c0_11 = arith.constant 0 : index
      %c0_12 = arith.constant 0 : index
      %14 = vector.load %arg10[%c1_10, %c0_11, %c0_12] : memref<2x3x32xf32, #tpu.memory_space<vmem>>, vector<1x3x32xf32>
      %15 = vector.shape_cast %14 : vector<1x3x32xf32> to vector<3x32xf32>
      %16 = arith.truncf %9 : vector<8x32xf32> to vector<8x32xbf16>
      %cst = arith.constant dense<0.000000e+00> : vector<8x32xf32>
      %17 = tpu.matmul %16, %13, %cst {dimension_numbers = #tpu.dot_dimension_numbers<[1], [0], [0], [1], [0, 0, 1, 1], [], []>} : vector<8x32xbf16>, vector<32x32xbf16>, vector<8x32xf32> -> vector<8x32xf32>
      %18 = vector.extract_strided_slice %15 {offsets = [0, 0], sizes = [1, 32], strides = [1, 1]} : vector<3x32xf32> to vector<1x32xf32>
      %19 = vector.broadcast %18 : vector<1x32xf32> to vector<8x32xf32>
      %20 = arith.addf %17, %19 : vector<8x32xf32>
      %21 = arith.addf %20, %11 : vector<8x32xf32>
      %cst_13 = arith.constant dense<0.000000e+00> : vector<8xf32>
      %22 = vector.multi_reduction <add>, %21, %cst_13 [1] : vector<8x32xf32> to vector<8xf32>
      %23 = vector.shape_cast %22 : vector<8xf32> to vector<8x1xf32>
      %cst_14 = arith.constant 3.200000e+01 : f32
      %24 = vector.broadcast %cst_14 : f32 to vector<8x1xf32>
      %25 = arith.divf %23, %24 : vector<8x1xf32>
      %26 = vector.broadcast %25 : vector<8x1xf32> to vector<8x32xf32>
      %27 = arith.subf %21, %26 : vector<8x32xf32>
      %28 = arith.mulf %27, %27 : vector<8x32xf32>
      %cst_15 = arith.constant dense<0.000000e+00> : vector<8xf32>
      %29 = vector.multi_reduction <add>, %28, %cst_15 [1] : vector<8x32xf32> to vector<8xf32>
      %30 = vector.shape_cast %29 : vector<8xf32> to vector<8x1xf32>
      %cst_16 = arith.constant 3.200000e+01 : f32
      %31 = vector.broadcast %cst_16 : f32 to vector<8x1xf32>
      %32 = arith.divf %30, %31 : vector<8x1xf32>
      %cst_17 = arith.constant 9.99999996E-13 : f32
      %33 = vector.broadcast %cst_17 : f32 to vector<8x1xf32>
      %34 = arith.addf %32, %33 : vector<8x1xf32>
      %35 = math.rsqrt %34 : vector<8x1xf32>
      %36 = vector.broadcast %35 : vector<8x1xf32> to vector<8x32xf32>
      %37 = arith.mulf %27, %36 : vector<8x32xf32>
      %38 = vector.extract_strided_slice %15 {offsets = [1, 0], sizes = [1, 32], strides = [1, 1]} : vector<3x32xf32> to vector<1x32xf32>
      %39 = vector.broadcast %38 : vector<1x32xf32> to vector<8x32xf32>
      %40 = arith.mulf %37, %39 : vector<8x32xf32>
      %41 = vector.extract_strided_slice %15 {offsets = [2, 0], sizes = [1, 32], strides = [1, 1]} : vector<3x32xf32> to vector<1x32xf32>
      %42 = vector.broadcast %41 : vector<1x32xf32> to vector<8x32xf32>
      %43 = arith.addf %40, %42 : vector<8x32xf32>
      %c0_18 = arith.constant 0 : index
      %c0_19 = arith.constant 0 : index
      %c0_20 = arith.constant 0 : index
      %44 = vector.load %arg11[%c0_18, %c0_19, %c0_20] : memref<1x8x32xf32, #tpu.memory_space<vmem>>, vector<1x8x32xf32>
      %45 = vector.shape_cast %44 : vector<1x8x32xf32> to vector<8x32xf32>
      %46 = vector.shape_cast %43 : vector<8x32xf32> to vector<1x8x32xf32>
      tpu.vector_store %arg11[%c0_18, %c0_19, %c0_20], %46 {strides = array<i32>} : memref<1x8x32xf32, #tpu.memory_space<vmem>>, vector<1x8x32xf32>,
    } else {
    }
    return
  }
  func.func @transform_0(%arg0: i32, %arg1: i32, %arg2: memref<2xi32, #tpu.memory_space<smem>>, %arg3: memref<2xi32, #tpu.memory_space<smem>>, %arg4: memref<2xi32, #tpu.memory_space<smem>>) -> (i32, i32, i32) {
    %0 = arith.index_cast %arg1 : i32 to index
    %1 = memref.load %arg3[%0] : memref<2xi32, #tpu.memory_space<smem>>
    %c0_i32 = arith.constant 0 : i32
    %c0_i32_0 = arith.constant 0 : i32
    return %arg0, %1, %c0_i32 : i32, i32, i32
  }
  func.func @transform_1(%arg0: i32, %arg1: i32, %arg2: memref<2xi32, #tpu.memory_space<smem>>, %arg3: memref<2xi32, #tpu.memory_space<smem>>, %arg4: memref<2xi32, #tpu.memory_space<smem>>) -> (i32, i32, i32) {
    %0 = arith.index_cast %arg1 : i32 to index
    %1 = memref.load %arg4[%0] : memref<2xi32, #tpu.memory_space<smem>>
    %c0_i32 = arith.constant 0 : i32
    %c0_i32_0 = arith.constant 0 : i32
    return %arg0, %1, %c0_i32 : i32, i32, i32
  }
  func.func @transform_2(%arg0: i32, %arg1: i32, %arg2: memref<2xi32, #tpu.memory_space<smem>>, %arg3: memref<2xi32, #tpu.memory_space<smem>>, %arg4: memref<2xi32, #tpu.memory_space<smem>>) -> (i32, i32, i32) {
    %0 = arith.index_cast %arg1 : i32 to index
    %1 = memref.load %arg3[%0] : memref<2xi32, #tpu.memory_space<smem>>
    %c0_i32 = arith.constant 0 : i32
    %c0_i32_0 = arith.constant 0 : i32
    return %arg0, %1, %c0_i32 : i32, i32, i32
  }
  func.func @transform_3(%arg0: i32, %arg1: i32, %arg2: memref<2xi32, #tpu.memory_space<smem>>, %arg3: memref<2xi32, #tpu.memory_space<smem>>, %arg4: memref<2xi32, #tpu.memory_space<smem>>) -> (i32, i32, i32) {
    %0 = arith.index_cast %arg1 : i32 to index
    %1 = memref.load %arg4[%0] : memref<2xi32, #tpu.memory_space<smem>>
    %c0_i32 = arith.constant 0 : i32
    %c0_i32_0 = arith.constant 0 : i32
    return %arg0, %1, %c0_i32 : i32, i32, i32
  }
  func.func @transform_4(%arg0: i32, %arg1: i32, %arg2: memref<2xi32, #tpu.memory_space<smem>>, %arg3: memref<2xi32, #tpu.memory_space<smem>>, %arg4: memref<2xi32, #tpu.memory_space<smem>>) -> (i32, i32, i32) {
    %c0_i32 = arith.constant 0 : i32
    %c0_i32_0 = arith.constant 0 : i32
    %c0_i32_1 = arith.constant 0 : i32
    %c0_i32_2 = arith.constant 0 : i32
    return %c0_i32, %c0_i32_0, %c0_i32_1 : i32, i32, i32
  }
  func.func @transform_5(%arg0: i32, %arg1: i32, %arg2: memref<2xi32, #tpu.memory_space<smem>>, %arg3: memref<2xi32, #tpu.memory_space<smem>>, %arg4: memref<2xi32, #tpu.memory_space<smem>>) -> (i32, i32, i32) {
    %c0_i32 = arith.constant 0 : i32
    %c0_i32_0 = arith.constant 0 : i32
    %c0_i32_1 = arith.constant 0 : i32
    %c0_i32_2 = arith.constant 0 : i32
    return %c0_i32, %c0_i32_0, %c0_i32_1 : i32, i32, i32
  }
  func.func @transform_6(%arg0: i32, %arg1: i32, %arg2: memref<2xi32, #tpu.memory_space<smem>>, %arg3: memref<2xi32, #tpu.memory_space<smem>>, %arg4: memref<2xi32, #tpu.memory_space<smem>>) -> (i32, i32, i32) {
    %c0_i32 = arith.constant 0 : i32
    %c0_i32_0 = arith.constant 0 : i32
    return %arg0, %arg1, %c0_i32 : i32, i32, i32
  }
}

</mosaic_0001>

<bundles_post_ra>
// kernel: tpu_custom_call.1
= control target key start
LH: loop header
LB: loop body
LE: loop exit
PB: predicated region body
PF: predicated region fallthrough
CT: control target
= control target key end

     0   :  { %s1481_s15 = smov [#allocation3]   ;;  %s1482_s16 = smov [#allocation4]   ;;  %s2109_s0 = inlined_call_operand.vmem [shape: s32[2], index: 0, kind: input, shape index: {}]   ;;  %s2110_s3 = inlined_call_operand.hbm [shape: f32[2,8,32], index: 3, kind: input, shape index: {}]   ;;  %s2111_s4 = inlined_call_operand.hbm [shape: f32[2,8,32], index: 4, kind: input, shape index: {}]   ;;  %s2112_s5 = inlined_call_operand.hbm [shape: f32[2,8,32], index: 5, kind: input, shape index: {}]   ;;  %s2113_s6 = inlined_call_operand.hbm [shape: f32[2,8,32], index: 6, kind: input, shape index: {}]   ;;  %s2114_s7 = inlined_call_operand.hbm [shape: bf16[2,32,32], index: 7, kind: input, shape index: {}]   ;;  %s2115_s8 = inlined_call_operand.vmem [shape: f32[2,3,32], index: 8, kind: input, shape index: {}]   ;;  %s2116_s9 = inlined_call_operand.hbm [shape: f32[2,16,32], index: 9, kind: output, shape index: {}]   ;;  %s2117_s1 = inlined_call_operand.vmem [shape: s32[2], index: 1, kind: input, shape index: {}]   ;;  %s2118_s2 = inlined_call_operand.vmem [shape: s32[2], index: 2, kind: input, shape index: {}]  }
   0x1   :  { %2147 = sst [smem:[#allocation50_spill]] %s2110_s3  ;;  %s15_s11 = sshll.u32 %s2109_s0, 4  ;;  %s16_s11 = int_to_ptr.vmem [resolvable:$true] %s15_s11 }
   0x2   :  { %2148 = sst [smem:[#allocation51_spill]] %s2111_s4  ;;  %s20_s14 = sshll.u32 %s2117_s1, 4  ;;  %s21_s14 = int_to_ptr.vmem [resolvable:$true] %s20_s14 }
   0x3   :  { %2149 = sst [smem:[#allocation52_spill]] %s2112_s5  ;;  %s25_s19 = sshll.u32 %s2118_s2, 4  ;;  %s26_s19 = int_to_ptr.vmem [resolvable:$true] %s25_s19 }
   0x4   :  { %2150 = sst [smem:[#allocation53_spill]] %s2113_s6  ;;  %s1483_s20 = smov [#allocation5]  }
   0x5   :  { %2151 = sst [smem:[#allocation54_spill]] %s2114_s7 }
   0x6   :  { %2152 = sst [smem:[#allocation55_spill]] %s2115_s8 }
   0x7   :  { %2153 = sst [smem:[#allocation56_spill]] %s2116_s9 }
   0x8   :  { %18 = dma.vmem_to_smem %s16_s11, 16, %s1481_s15, [#allocation2] }
   0x9   :  { %23 = dma.vmem_to_smem %s21_s14, 16, %s1482_s16, [#allocation2] }
   0xa   :  { %28 = dma.vmem_to_smem %s26_s19, 16, %s1483_s20, [#allocation2] }
   0xb   :  { %1375 = dma.done.wait [#allocation2], 48 }
   0xc   :  { %1376 = vsyncadd [#allocation2], 4294967248 }
   0xd   :  { %31 = sfence }
   0xe   :  { %32 = vsyncpa [#allocation7], 0 }
   0xf   :  { %34 = vsyncpa [#allocation7 + $0x1], 0 }
  0x10   :  { %35 = vsyncpa [#allocation10], 0 }
  0x11   :  { %37 = vsyncpa [#allocation10 + $0x1], 0 }
  0x12   :  { %38 = vsyncpa [#allocation13], 0 }
  0x13   :  { %40 = vsyncpa [#allocation13 + $0x1], 0 }
  0x14   :  { %41 = vsyncpa [#allocation8], 0 }
  0x15   :  { %43 = vsyncpa [#allocation8 + $0x1], 0  ;;  %s1548_s0 = smov 0   ;;  %s1550_s1 = smov 0  }
  0x16   :  { %s1552_s21 = smov 0   ;;  %s1554_s2 = smov 0  }
  0x17   :  { %s1556_s22 = smov 0   ;;  %s1558_s23 = smov 0  }
  0x18   :  { %s1560_s24 = smov 0   ;;  %s1562_s25 = smov 0  }
  0x19   :  { %s1564_s26 = smov 0   ;;  %s1566_s27 = smov 0  }
  0x1a   :  { %s1568_s28 = smov 0   ;;  %s1570_s29 = smov 0  }
  0x1b   :  { %s1572_s30 = smov 0   ;;  %s1574_s10 = smov 0  }
  0x1c   :  { %s1576_s11 = smov 0   ;;  %s1578_s12 = smov 0  }
  0x1d   :  { %s1580_s13 = smov 0   ;;  %s1582_s14 = smov 0  }
  0x1e   :  { %s1584_s15 = smov 0   ;;  %s1586_s16 = smov 0  }
  0x1f LB: > { %2154 = sst [smem:[#allocation31_spill]] %s1403_s0  ;;  %s1649_s17 = sadd.s32 4294967295, %s1479_s16   ;;  %s1479_s16 = sphi %s1586_s16, %s49_s16   ;;  %s1475_s15 = sphi %s1584_s15, %s2258_s15   ;;  %s1471_s14 = sphi %s1582_s14, %s2257_s14   ;;  %s1467_s13 = sphi %s1580_s13, %s2256_s13   ;;  %s1463_s12 = sphi %s1578_s12, %s2255_s12   ;;  %s1459_s11 = sphi %s1576_s11, %s2245_s11   ;;  %s1455_s10 = sphi %s1574_s10, %s2244_s10   ;;  %s1451_s30 = sphi %s1572_s30, %s2243_s30   ;;  %s1447_s29 = sphi %s1570_s29, %s2242_s29   ;;  %s1443_s28 = sphi %s1568_s28, %s2241_s28   ;;  %s1439_s27 = sphi %s1566_s27, %s2240_s27   ;;  %s1435_s26 = sphi %s1564_s26, %s2254_s26   ;;  %s1431_s25 = sphi %s1562_s25, %s2253_s25   ;;  %s1427_s24 = sphi %s1560_s24, %s2252_s24   ;;  %s1423_s23 = sphi %s1558_s23, %s2251_s23   ;;  %s1419_s22 = sphi %s1556_s22, %s2249_s22   ;;  %s1415_s2 = sphi %s1554_s2, %s2248_s2   ;;  %s1411_s21 = sphi %s1552_s21, %s2239_s21   ;;  %s1407_s1 = sphi %s1550_s1, %s2238_s1   ;;  %s1403_s0 = sphi %s1548_s0, %s2237_s0  }
  0x20   : > { %2155 = sst [smem:[#allocation32_spill]] %s1407_s1  ;;  %s801_s18 = sadd.s32 4294967294, %s1479_s16  }
  0x21   : > { %2156 = sst [smem:[#allocation33_spill]] %s1411_s21  ;;  %p2136_p0 = scmp.eq.s32.totalorder %s1649_s17, 0 }
  0x22   : > { %2157 = sst [smem:[#allocation34_spill]] %s1443_s28  ;;  %p242_p1 = scmp.ne.s32.totalorder %s1411_s21, %s1407_s1 }
  0x23   : > { %2158 = sst [smem:[#allocation35_spill]] %s1447_s29  ;;  %p243_p2 = scmp.eq.s32.totalorder %s1649_s17, 3 }
  0x24   : > { %2159 = sst [smem:[#allocation36_spill]] %s1455_s10  ;;  %p248_p3 = scmp.ne.s32.totalorder %s1407_s1, %s1403_s0 }
  0x25   : > { %2160 = sst [smem:[#allocation37_spill]] %s1459_s11  ;;  %p249_p4 = scmp.eq.s32.totalorder %s801_s18, 3 }
  0x26   : > { %2161 = sst [smem:[#allocation38_spill]] %s1463_s12  ;;  %p802_p5 = scmp.ge.s32.totalorder %s1479_s16, 1 }
  0x27   : > { %2162 = sst [smem:[#allocation39_spill]] %s1467_s13  ;;  %p1659_p6 = por %p243_p2, %p242_p1 }
  0x28   : > { %p256_p7 = scmp.lt.s32.totalorder %s1479_s16, 5  ;;  %p1664_p8 = por %p249_p4, %p248_p3 }
  0x29   : > { %s2163_s19 = scalar_select %p1659_p6, 1, 0 }
  0x2a   : > { %s2165_s20 = scalar_select %p1664_p8, 1, 0 }
  0x2b   : > { %2164 = sst [smem:[#allocation40_spill]] %s2163_s19  ;;  %p1668_p9 = pnand %p802_p5, %p256_p7 }
  0x2c   : > { %2166 = sst [smem:[#allocation41_spill]] %s2165_s20  ;;  %s1484_s19 = smov [#allocation14]  }
  0x2d   : > { %s2167_s9 = scalar_select %p1668_p9, 1, 0 }
  0x2e   : > { %s2169_s7 = sld [smem:[#allocation54_spill]]  ;;  %p872_p10 = pneg %p1668_p9 }
  0x2f   : > { %2168 = sst [smem:[#allocation42_spill]] %s2167_s9  ;;  %s269_s8 = sshll.u32 %s1484_s19, 4  ;;  %s270_s8 = int_to_ptr.vmem [resolvable:$true] %s269_s8 }
  0x30   : > { %p873_p11 = pnand %p872_p10, %p2136_p0  ;;  %s1485_s20 = smov 64  }
  0x31   : > { %s1486_s0 = smov 4   ;;  %s58_s13 = sadd.s32 1, %s1471_s14 }
  0x32   : > { %p59_p12 = scmp.ge.s32.totalorder %s58_s13, 2  ;;  %s95_s12 = sld [smem:[#allocation5 + %s1471_s14]] }
  0x33   : > { %p2139_p13 = scmp.eq.s32.totalorder %s1479_s16, 0  ;;  %s102_s1 = sadd.s32 1, %s1447_s29 }
  0x34   : > { %s267_s18 = sshll.u32 %s2169_s7, 4  ;;  %s61_s7 = sadd.s32 1, %s1475_s15  ;;  %s268_s18 = int_to_ptr.hbm [resolvable:$true] %s267_s18 }
  0x35   : > { %875 = dma.hbm_to_vmem [thread:$0]  (!%p873_p11), %s268_s18, 512, %s270_s8, [#allocation13], %s1485_s20, %s1485_s20, %s1486_s0  }
  0x36   : > { %s2260_s13 = smov (%p59_p12, %s58_s13), 0  ;;  %s2262_s7 = smov (!%p59_p12, %s61_s7), %s1475_s15 }
  0x37   : > { %s96_s19 = sld [smem:[#allocation5 + %s2260_s13]]  ;;  %p63_p1 = scmp.ge.s32.totalorder %s2262_s7, 2 }
  0x38   : > { %p115_p2 = scmp.ne.s32.totalorder %s1443_s28, %s1439_s27  ;;  %s228_s8 = ssub.s32 %s1471_s14, %s2260_s13 }
  0x39   : > { %s2264_s7 = smov (%p63_p1, %s2262_s7), 0  ;;  %p109_p3 = scmp.ne.s32.totalorder %s1447_s29, %s1443_s28 }
  0x3a   : > { %2170 = sst [smem:[#allocation43_spill]] %s2264_s7  ;;  %p1698_p4 = por %p115_p2, %p2136_p0 }
  0x3b   : > { %s1704_s18 = ssub.s32 %s1475_s15, %s2264_s7  ;;  %s232_s0 = sadd.s32 1, %s1411_s21 }
  0x3c   : > { %s2171_s20 = scalar_select %p1698_p4, 1, 0 }
  0x3d   : > { %s98_s27 = ssub.s32 %s95_s12, %s96_s19  ;;  %s229_s9 = sor.u32 %s228_s8, %s1704_s18 }
  0x3e   : > { %2172 = sst [smem:[#allocation44_spill]] %s2171_s20  ;;  %s99_s6 = sor.u32 %s98_s27, %s1704_s18 }
  0x3f   : > { %p230_p5 = scmp.eq.s32.totalorder %s229_s9, 0  ;;  %p100_p7 = scmp.eq.s32.totalorder %s99_s6, 0 }
  0x40   : > { %p111_p10 = por %p109_p3, %p2139_p13  ;;  %p2140_p11 = scmp.lt.s32.totalorder %s1479_s16, 4 }
  0x41   : > { %s1712_s28 = scalar_select %p230_p5, %s1411_s21, %s232_s0  }
  0x42   : > { %s1715_s20 = scalar_select %p100_p7, %s1447_s29, %s102_s1  }
  0x43   : > { %2173 = sst [smem:[#allocation45_spill]] %s1712_s28  ;;  %s309_s7 = sand.u32 1, %s1447_s29  }
  0x44   : > { %2174 = sst [smem:[#allocation46_spill]] %s1715_s20  ;;  %s807_s19 = sshll.u32 %s309_s7, 3 }
  0x45   : > { %p1722_p12 = pnand %p2140_p11, %p111_p10  ;;  %s311_s0 = scalar_lea.vmem [#allocation9], %s807_s19 }
  0x46   : > { %s855_s9 = scalar_select %p111_p10, [#allocation5], [#allocation17] }
  0x47   : > { %s856_s8 = scalar_select %p111_p10, %s1471_s14, 0 }
  0x48   : > { %s2266_s9 = smov (!%p2140_p11, %s855_s9), [#allocation21]  ;;  %s1731_s27 = sshll.u32 %s311_s0, 4 }
  0x49   : > { %s2268_s8 = smov (!%p2140_p11, %s856_s8), 0  ;;  %2176 = sst [smem:[#allocation47_spill]] %s1731_s27 }
  0x4a   : > { %s312_s1 = sld [smem:[%s2266_s9 + %s2268_s8]]  ;;  %p79_p1 = scmp.ne.s32.totalorder %s1459_s11, %s1455_s10 }
  0x4b   : > { %s1735_s7 = sld [smem:[#allocation4 + %s1471_s14]]  ;;  %p85_p2 = scmp.ne.s32.totalorder %s1455_s10, %s1451_s30 }
  0x4c   : > { %s1738_s12 = sld [smem:[#allocation4 + %s2260_s13]]  ;;  %s72_s28 = sadd.s32 1, %s1459_s11 }
  0x4d   : > { %s2177_s4 = sld [smem:[#allocation51_spill]]  ;;  %p1751_p3 = por %p2136_p0, %p85_p2 }
  0x4e   : > { %p1758_p5 = por %p2139_p13, %p79_p1  ;;  %s2181_s30 = sand.u32 1, %s1479_s16  }
  0x4f   : > { %s2178_s19 = scalar_select %p1751_p3, 1, 0 }
  0x50   : > { %s315_s20 = sadd.s32 %s1475_s15, %s312_s1  ;;  %p1151_p10 = pneg %p1722_p12 }
  0x51   : > { %s808_s29 = sshll.u32 %s315_s20, 3  ;;  %2179 = sst [smem:[#allocation48_spill]] %s2178_s19 }
  0x52   : > { %s1764_s20 = scalar_lea.sflag [#allocation10], %s2181_s30 }
  0x53   : > { %s317_s9 = scalar_lea.hbm %s2177_s4, %s808_s29 }
  0x54   : > { %s319_s8 = sshll.u32 %s317_s9, 4  ;;  %s1154_s9 = scalar_lea.hbm %s2177_s4, 16  ;;  %s320_s8 = int_to_ptr.hbm [resolvable:$true] %s319_s8 }
  0x55   : > { %s1147_s1 = sshra.s32 %s320_s8, 4  ;;  %s1148_s1 = int_to_ptr.hbm [resolvable:$true] %s1147_s1 }
  0x56   : > { %s1149_s5 = scalar_lea.hbm %s1148_s1, 8  ;;  %p1155_p1 = scmp.lt.s32.totalorder %s1148_s1, %s2177_s4 }
  0x57   : > { %p1150_p7 = scmp.ne.s32.totalorder %s1148_s1, %s1149_s5  ;;  %p1156_p13 = scmp.lt.s32.totalorder %s1154_s9, %s1149_s5 }
  0x59   : > { %p1152_p2 = pnand %p1151_p10, %p1150_p7  ;;  %p1157_p11 = por %p1156_p13, %p1155_p1 }
  0x5b   : > { %p1153_p0 = pneg %p1152_p2 }
  0x5d   : > { %p1158_p8 = pnand %p1157_p11, %p1153_p0 }
  0x5f   : > { %1161 = shalt.err (!%p1158_p8)
}
  0x60   : > { %s2182_s30 = sld [smem:[#allocation47_spill]]  ;;  %s68_s19 = ssub.s32 %s1735_s7, %s1738_s12 }
  0x61   : > { %s2184_s6 = sand.u32 1, %s1459_s11   ;;  %s69_s1 = sor.u32 %s68_s19, %s1704_s18 }
  0x62   : > { %s805_s0 = sshll.u32 %s2184_s6, 3  ;;  %p70_p0 = scmp.eq.s32.totalorder %s69_s1, 0 }
  0x63   : > { %s852_s5 = scalar_select %p1758_p5, [#allocation4], [#allocation16] }
  0x64   : > { %s1787_s21 = scalar_select %p70_p0, %s1459_s11, %s72_s28  }
  0x65   : > { %s853_s29 = scalar_select %p1758_p5, %s1471_s14, 0 }
  0x66   : > { %s2183_s10 = int_to_ptr.vmem [resolvable:$true] %s2182_s30  ;;  %2185 = sst [smem:[#allocation49_spill]] %s1787_s21 }
  0x67   : > { %886 = dma.hbm_to_vmem [thread:$0]  (!%p1722_p12), %s320_s8, 128, %s2183_s10, %s1764_s20  }
  0x68   : > { %p2186_p8 = scmp.lt.s32.totalorder %s1479_s16, 4  ;;  %s290_s10 = scalar_lea.vmem [#allocation6], %s805_s0 }
  0x69   : > { %s1796_s12 = sshll.u32 %s290_s10, 4  ;;  %s1808_s8 = sld [smem:[#allocation4 + %s1471_s14]] }
  0x6a   : > { %s2270_s5 = smov (!%p2186_p8, %s852_s5), [#allocation20]  ;;  %p2187_p13 = pmov %p2186_p8 }
  0x6b   : > { %2188 = sst [smem:[#allocation47_spill]] %s1796_s12  ;;  %p2189_p11 = pmov %p2186_p8 }
  0x6c   : > { %s2272_s29 = smov (!%p2187_p13, %s853_s29), 0  ;;  %s1811_s9 = sld [smem:[#allocation4 + %s2260_s13]] }
  0x6d   : > { %p1802_p12 = pnand %p2189_p11, %p1758_p5  ;;  %s291_s28 = sld [smem:[%s2270_s5 + %s2272_s29]] }
  0x6e   : > { %p139_p7 = scmp.ne.s32.totalorder %s1435_s26, %s1431_s25  ;;  %p145_p10 = scmp.ne.s32.totalorder %s1431_s25, %s1427_s24 }
  0x6f   : > { %p2191_p2 = scmp.eq.s32.totalorder %s1479_s16, 0  ;;  %s2193_s3 = sld [smem:[#allocation50_spill]] }
  0x70   : > { %p2194_p5 = scmp.eq.s32.totalorder %s1649_s17, 0  ;;  %s330_s10 = sand.u32 1, %s1435_s26  }
  0x71   : > { %p1820_p1 = por %p139_p7, %p2191_p2  ;;  %s2196_s24 = sand.u32 1, %s1459_s11  }
  0x72   : > { %p1829_p0 = por %p145_p10, %p2194_p5  ;;  %p1181_p13 = pneg %p1802_p12 }
  0x73   : > { %s294_s30 = sadd.s32 %s1475_s15, %s291_s28  ;;  %s1834_s28 = sshll.u32 %s330_s10, 3 }
  0x74   : > { %s806_s19 = sshll.u32 %s294_s30, 3  ;;  %s287_s30 = scalar_lea.sflag [#allocation7], %s2196_s24 }
  0x75   : > { %s296_s1 = scalar_lea.hbm %s2193_s3, %s806_s19  ;;  %s1184_s0 = scalar_lea.hbm %s2193_s3, 16 }
  0x76   : > { %s2195_s5 = scalar_select %p1829_p0, 1, 0 }
  0x77   : > { %s298_s29 = sshll.u32 %s296_s1, 4  ;;  %s299_s29 = int_to_ptr.hbm [resolvable:$true] %s298_s29 }
  0x78   : > { %s1177_s12 = sshra.s32 %s299_s29, 4  ;;  %s1178_s12 = int_to_ptr.hbm [resolvable:$true] %s1177_s12 }
  0x79   : > { %s1179_s4 = scalar_lea.hbm %s1178_s12, 8  ;;  %p1185_p10 = scmp.lt.s32.totalorder %s1178_s12, %s2193_s3 }
  0x7a   : > { %p1180_p8 = scmp.ne.s32.totalorder %s1178_s12, %s1179_s4  ;;  %p1186_p2 = scmp.lt.s32.totalorder %s1184_s0, %s1179_s4 }
  0x7c   : > { %p1182_p11 = pnand %p1181_p13, %p1180_p8  ;;  %p1187_p5 = por %p1186_p2, %p1185_p10 }
  0x7e   : > { %p1183_p7 = pneg %p1182_p11 }
  0x80   : > { %p1188_p6 = pnand %p1187_p5, %p1183_p7 }
  0x82   : > { %1191 = shalt.err (!%p1188_p6)
}
  0x83   : > { %s2197_s10 = sld [smem:[#allocation47_spill]]  ;;  %s128_s4 = ssub.s32 %s1808_s8, %s1811_s9 }
  0x84   : > { %s129_s21 = sor.u32 %s128_s4, %s1704_s18  ;;  %s132_s12 = sadd.s32 1, %s1435_s26 }
  0x85   : > { %p130_p6 = scmp.eq.s32.totalorder %s129_s21, 0  ;;  %p2199_p8 = scmp.lt.s32.totalorder %s1479_s16, 4 }
  0x86   : > { %s858_s7 = scalar_select %p1820_p1, [#allocation4], [#allocation18] }
  0x87   : > { %s1857_s19 = scalar_select %p130_p6, %s1435_s26, %s132_s12  }
  0x88   : > { %s859_s6 = scalar_select %p1820_p1, %s1471_s14, 0 }
  0x89   : > { %s2198_s24 = int_to_ptr.vmem [resolvable:$true] %s2197_s10  ;;  %s2274_s7 = smov (!%p2199_p8, %s858_s7), [#allocation22] }
  0x8a   : > { %881 = dma.hbm_to_vmem [thread:$0]  (!%p1802_p12), %s299_s29, 128, %s2198_s24, %s287_s30  }
  0x8b   : > { %p2200_p13 = pmov %p2199_p8  ;;  %p2201_p12 = pmov %p2199_p8 }
  0x8c   : > { %s1875_s29 = sld [smem:[#allocation5 + %s1471_s14]]  ;;  %s332_s30 = scalar_lea.vmem [#allocation11], %s1834_s28 }
  0x8d   : > { %s2276_s6 = smov (!%p2200_p13, %s859_s6), 0  ;;  %p1870_p11 = pnand %p2201_p12, %p1820_p1 }
  0x8e   : > { %s333_s9 = sld [smem:[%s2274_s7 + %s2276_s6]]  ;;  %s342_s0 = sshll.u32 %s332_s30, 4  ;;  %s343_s0 = int_to_ptr.vmem [resolvable:$true] %s342_s0 }
  0x8f   : > { %s156_s1 = sld [smem:[#allocation5 + %s2260_s13]]  ;;  %p169_p7 = scmp.ne.s32.totalorder %s1423_s23, %s1419_s22 }
  0x90   : > { %p175_p10 = scmp.ne.s32.totalorder %s1419_s22, %s1415_s2  ;;  %s2203_s21 = sld [smem:[#allocation52_spill]] }
  0x91   : > { %p2205_p1 = scmp.eq.s32.totalorder %s1649_s17, 0  ;;  %p2207_p5 = scmp.eq.s32.totalorder %s1479_s16, 0 }
  0x92   : > { %p1211_p13 = pneg %p1870_p11 }
  0x93   : > { %p1889_p2 = por %p175_p10, %p2205_p1  ;;  %p1895_p6 = por %p169_p7, %p2207_p5 }
  0x94   : > { %s336_s10 = sadd.s32 %s1475_s15, %s333_s9 }
  0x95   : > { %s810_s24 = sshll.u32 %s336_s10, 3  ;;  %s158_s2 = ssub.s32 %s1875_s29, %s156_s1 }
  0x96   : > { %s2204_s3 = smov %s2203_s21  ;;  %s338_s12 = scalar_lea.hbm %s2203_s21, %s810_s24 }
  0x97   : > { %s340_s7 = sshll.u32 %s338_s12, 4  ;;  %s1214_s24 = scalar_lea.hbm %s2204_s3, 16  ;;  %s341_s7 = int_to_ptr.hbm [resolvable:$true] %s340_s7 }
  0x98   : > { %s1207_s6 = sshra.s32 %s341_s7, 4  ;;  %s1208_s6 = int_to_ptr.hbm [resolvable:$true] %s1207_s6 }
  0x99   : > { %s1209_s9 = scalar_lea.hbm %s1208_s6, 8  ;;  %p1215_p7 = scmp.lt.s32.totalorder %s1208_s6, %s2204_s3 }
  0x9a   : > { %p1210_p8 = scmp.ne.s32.totalorder %s1208_s6, %s1209_s9  ;;  %p1216_p10 = scmp.lt.s32.totalorder %s1214_s24, %s1209_s9 }
  0x9c   : > { %p1212_p12 = pnand %p1211_p13, %p1210_p8  ;;  %p1217_p1 = por %p1216_p10, %p1215_p7 }
  0x9e   : > { %p1213_p0 = pneg %p1212_p12 }
  0xa0   : > { %p1218_p5 = pnand %p1217_p1, %p1213_p0 }
  0xa2   : > { %1221 = shalt.err (!%p1218_p5)
}
  0xa3   : > { %891 = dma.hbm_to_vmem [thread:$0]  (!%p1870_p11), %s341_s7, 128, %s343_s0, %s1764_s20  }
  0xa4   : > { %s159_s29 = sor.u32 %s158_s2, %s1704_s18  ;;  %s162_s1 = sadd.s32 1, %s1423_s23 }
  0xa5   : > { %p160_p0 = scmp.eq.s32.totalorder %s159_s29, 0  ;;  %s351_s21 = sand.u32 1, %s1423_s23  }
  0xa6   : > { %s861_s8 = scalar_select %p1895_p6, [#allocation5], [#allocation19] }
  0xa7   : > { %s1917_s12 = scalar_select %p160_p0, %s1423_s23, %s162_s1  }
  0xa8   : > { %s862_s6 = scalar_select %p1895_p6, %s1471_s14, 0 }
  0xa9   : > { %p2209_p8 = scmp.lt.s32.totalorder %s1479_s16, 4  ;;  %s811_s9 = sshll.u32 %s351_s21, 3 }
  0xaa   : > { %s353_s0 = scalar_lea.vmem [#allocation12], %s811_s9  ;;  %s2213_s4 = sld [smem:[#allocation53_spill]] }
  0xab   : > { %s2278_s8 = smov (!%p2209_p8, %s861_s8), [#allocation23]  ;;  %p2210_p13 = pmov %p2209_p8 }
  0xac   : > { %p2211_p12 = pmov %p2209_p8  ;;  %s363_s7 = sshll.u32 %s353_s0, 4  ;;  %s364_s7 = int_to_ptr.vmem [resolvable:$true] %s363_s7 }
  0xad   : > { %s2280_s6 = smov (!%p2210_p13, %s862_s6), 0  ;;  %s2214_s1 = sand.u32 1, %s1479_s16  }
  0xae   : > { %p1930_p7 = pnand %p2211_p12, %p1895_p6  ;;  %s354_s18 = sld [smem:[%s2278_s8 + %s2280_s6]] }
  0xaf   : > { %s350_s28 = scalar_lea.sflag [#allocation13], %s2214_s1 }
  0xb0   : > { %p1241_p6 = pneg %p1930_p7  ;;  %s1244_s9 = scalar_lea.hbm %s2213_s4, 16 }
  0xb4   : > { %s357_s2 = sadd.s32 %s1475_s15, %s354_s18 }
  0xb5   : > { %s812_s30 = sshll.u32 %s357_s2, 3 }
  0xb6   : > { %s359_s27 = scalar_lea.hbm %s2213_s4, %s812_s30 }
  0xb7   : > { %s361_s29 = sshll.u32 %s359_s27, 4  ;;  %s362_s29 = int_to_ptr.hbm [resolvable:$true] %s361_s29 }
  0xb8   : > { %s1237_s21 = sshra.s32 %s362_s29, 4  ;;  %s1238_s21 = int_to_ptr.hbm [resolvable:$true] %s1237_s21 }
  0xb9   : > { %s1239_s3 = scalar_lea.hbm %s1238_s21, 8  ;;  %p1245_p5 = scmp.lt.s32.totalorder %s1238_s21, %s2213_s4 }
  0xba   : > { %p1240_p11 = scmp.ne.s32.totalorder %s1238_s21, %s1239_s3  ;;  %p1246_p0 = scmp.lt.s32.totalorder %s1244_s9, %s1239_s3 }
  0xbc   : > { %p1242_p10 = pnand %p1241_p6, %p1240_p11  ;;  %p1247_p8 = por %p1246_p0, %p1245_p5 }
  0xbe   : > { %p1243_p1 = pneg %p1242_p10 }
  0xc0   : > { %p1248_p13 = pnand %p1247_p8, %p1243_p1 }
  0xc2   : > { %1251 = shalt.err (!%p1248_p13)
}
  0xc3   : > { %896 = dma.hbm_to_vmem [thread:$0]  (!%p1930_p7), %s362_s29, 128, %s364_s7, %s350_s28  }
  0xc4   : > { %372 = sbr.rel (%p1668_p9) target bundleno = 1091 (0x443), region = 44  ;;  %s2216_s30 = sld [smem:[#allocation36_spill]] (!%p1668_p9) }
  0xca   : > { %s374_s24 = sand.u32 1, %s2216_s30  }
  0xcb   : > { %s1953_s27 = sshll.u32 %s374_s24, 3  ;;  %s375_s1 = scalar_lea.sflag [#allocation7], %s374_s24 }
  0xcc   : > { %s378_s8 = scalar_lea.vmem [#allocation6], %s1953_s27 }
  0xcd   : > { %1378 = dma.done.wait (%p1751_p3), %s375_s1, 128  }
  0xce   : > { %1380 = vsyncadd (%p1751_p3), %s375_s1, 4294967168  ;;  %s2218_s3 = sld [smem:[#allocation34_spill]]  ;;  %s384_s7 = sand.u32 1, %s1649_s17  }
  0xcf   : > { %s385_s21 = scalar_lea.sflag [#allocation10], %s384_s7 }
  0xd4   : > { %s386_s29 = sand.u32 1, %s2218_s3  }
  0xd5   : > { %s1962_s28 = sshll.u32 %s386_s29, 3 }
  0xd6   : > { %s388_s6 = scalar_lea.vmem [#allocation9], %s1962_s28 }
  0xd7   : > { %1382 = dma.done.wait (%p1698_p4), %s385_s21, 128  }
  0xd8   : > { %1384 = vsyncadd (%p1698_p4), %s385_s21, 4294967168  ;;  %s396_s9 = sand.u32 1, %s1431_s25   ;;  %p2220_p9 = scmp.ne.s32.totalorder %s2195_s5, 0 }
  0xd9   : > { %s1970_s18 = sshll.u32 %s396_s9, 3 }
  0xda   : > { %s398_s0 = scalar_lea.vmem [#allocation11], %s1970_s18 }
  0xdb   : > { %1386 = dma.done.wait (%p2220_p9), %s385_s21, 128  }
  0xdc   : > { %1388 = vsyncadd (%p2220_p9), %s385_s21, 4294967168  ;;  %s406_s2 = sand.u32 1, %s1419_s22   ;;  %s405_s10 = scalar_lea.sflag [#allocation13], %s384_s7 }
  0xdd   : > { %s1978_s30 = sshll.u32 %s406_s2, 3 }
  0xde   : > { %s408_s24 = scalar_lea.vmem [#allocation12], %s1978_s30 }
  0xdf   : > { %1390 = dma.done.wait (%p1889_p2), %s405_s10, 128  }
  0xe0   : > { %1392 = vsyncadd (%p1889_p2), %s405_s10, 4294967168  ;;  %p2221_p4 = scmp.eq.s32.totalorder %s1649_s17, 0 }
  0xe2   : > { %1394 = dma.done.wait (%p2221_p4), [#allocation13], 512   ;;  %p2222_p3 = pmov %p2221_p4 }
  0xe3   : > { %s2223_s5 = sld [smem:[#allocation32_spill]] }
  0xe4   : > { %1396 = vsyncadd (%p2222_p3), [#allocation13], 4294966784  ;;  %s2224_s1 = sld [smem:[#allocation38_spill]] }
  0xe9   : > { %s455_s3 = sand.u32 1, %s2223_s5  }
  0xea   : > { %s1991_s20 = sld [smem:[#allocation3 + %s2224_s1]]  ;;  %s819_s7 = sshll.u32 %s455_s3, 3 }
  0xeb   : > { %s1995_s29 = scalar_lea.vmem [#allocation15], %s819_s7 }
  0xf0   : > { %p820_p12 = scmp.ne.s32.totalorder %s1991_s20, 0 }
  0xf1   : > { %s2225_s21 = sld [smem:[#allocation55_spill]] (!%p820_p12) }
  0xf2   : > { %467 = sbr.rel (%p820_p12) target bundleno = 654 (0x28e), region = 68 }
  0xf7   : > { %v847_v0 = vld [vmem:[#allocation14 + $0x8] sm:$0xff]  ;;  %v846_v1 = vld [vmem:[#allocation14] sm:$0xff]  ;;  %vm489_vm0 = vcmask 261120   ;;  %v1487_v12 = vmov 32.0  }
  0xf8   : > { %499 = vmatpush.bf16.msra.mxu0 %v847_v0  ;;  %v468_v2 = vld [vmem:[%s378_s8] sm:$0xff]  ;;  %1073 = vrcp.f32 %v1487_v12 }
  0xf9   : > { %v475_v3 = vpack.c.bf16 %v468_v2, %v468_v2  ;;  %v474_v4 = vld [vmem:[%s2225_s21] sm:$0x7] }
  0xfa   : > { %v476_v5 = vperm.slane %v474_v4, 0  ;;  %v469_v7 = vld [vmem:[%s398_s0] sm:$0xff]  ;;  %v536_v33 = vperm.slane %v474_v4, 1  ;;  %v538_v35 = vperm.slane %v474_v4, 2 }
  0xfc   : > { %500 = vmatpush.bf16.msra.mxu0 %v846_v1 }
  0xfe   : > { %v1074_v13 = vpop.eup %1073 }
  0xff   : > { %829 = vmatmul.msk.bf16.vlgmr.msra.gmra.mxu0 %vm489_vm0, %v475_v3  ;;  %v511_v14 = vmul.f32 32.0, %v1074_v13  ;;  %vm515_vm1 = vweird.f32 %v1074_v13 }
 0x101   : > { %v512_v15 = vsub.f32 1.0, %v511_v14 }
 0x103   : > { %v513_v16 = vmul.f32 %v1074_v13, %v512_v15 }
 0x105   : > { %v514_v17 = vadd.f32 %v1074_v13, %v513_v16 }
 0x107   : > { %v516_v18 = vsel %vm515_vm1, %v1074_v13, %v514_v17 }
 0x17c   : > { %v502_v6 = vpop.f32.mrf.mxu0 }
 0x17d   : > { %v503_v8 = vadd.f32 %v502_v6, %v476_v5 }
 0x17f   : > { %v506_v9 = vadd.f32 %v503_v8, %v469_v7 }
 0x181   : > { %v507_v10 = vsel %vm489_vm0, %v506_v9, 0.0 }
 0x182   : > { %508 = vadd.xlane.f32.xlu0 %v507_v10 }
 0x184   : > { %v504_v11 = vpop.f32.mrf.mxu0 }
 0x1f5   : > { %v509_v19 = vpop.xlane.xlu0 %508 }
 0x1f6   : > { %v517_v20 = vmul.f32 %v516_v18, %v509_v19 }
 0x1f8   : > { %v518_v21 = vsub.f32 %v506_v9, %v517_v20 }
 0x1fa   : > { %v519_v22 = vmul.f32 %v518_v21, %v518_v21 }
 0x1fc   : > { %v520_v23 = vsel %vm489_vm0, %v519_v22, 0.0 }
 0x1fd   : > { %521 = vadd.xlane.f32.xlu0 %v520_v23 }
 0x270   : > { %v522_v24 = vpop.xlane.xlu0 %521 }
 0x271   : > { %v523_v25 = vmul.f32 %v522_v24, %v516_v18 }
 0x273   : > { %v524_v26 = vadd.f32 1e-12, %v523_v25 }
 0x275   : > { %1075 = vrsqrt.f32 %v524_v26  ;;  %vm531_vm3 = vweird.f32 %v524_v26 }
 0x27b   : > { %v1076_v27 = vpop.eup %1075 }
 0x27c   : > { %v526_v28 = vmul.f32 %v1076_v27, %v524_v26  ;;  %vm532_vm2 = vweird.f32 %v1076_v27 }
 0x27d   : > { %vm533_vm4 = vmor %vm531_vm3, %vm532_vm2 }
 0x27e   : > { %v527_v29 = vmul.f32 %v1076_v27, %v526_v28 }
 0x280   : > { %v528_v30 = vmul.f32 0.5, %v527_v29 }
 0x282   : > { %v529_v31 = vsub.f32 1.5, %v528_v30 }
 0x284   : > { %v530_v32 = vmul.f32 %v1076_v27, %v529_v31 }
 0x286   : > { %v534_v34 = vsel %vm533_vm4, %v1076_v27, %v530_v32 }
 0x287   : > { %v535_v36 = vmul.f32 %v534_v34, %v518_v21 }
 0x289   : > { %v537_v37 = vmul.f32 %v536_v33, %v535_v36 }
 0x28b   : > { %v539_v38 = vadd.f32 %v538_v35, %v537_v37 }
 0x28d   : > { %540 = vst.msk [vmem:[%s1995_s29] sm:$0xff] %vm489_vm0, %v539_v38 }
 0x28e PF: > { %p830_p2 = scmp.eq.s32.totalorder %s1991_s20, 0 }
 0x28f   : > { %s2226_s9 = sld [smem:[#allocation55_spill]] (!%p830_p2) }
 0x290   : > { %544 = sbr.rel (%p830_p2) target bundleno = 1068 (0x42c), region = 72 }
 0x295   : > { %v849_v39 = vld [vmem:[#allocation14 + $0x18] sm:$0xff]  ;;  %v848_v40 = vld [vmem:[#allocation14 + $0x10] sm:$0xff]  ;;  %vm568_vm5 = vcmask 261120   ;;  %v831_v43 = vld [vmem:[%s2226_s9 + $0x4] sm:$0x7]  ;;  %v1488_v51 = vmov 32.0  }
 0x296   : > { %578 = vmatpush.bf16.msra.mxu0 %v849_v39  ;;  %v545_v41 = vld [vmem:[%s388_s6] sm:$0xff]  ;;  %v555_v44 = vperm.slane %v831_v43, 0  ;;  %1077 = vrcp.f32 %v1488_v51  ;;  %v615_v8 = vperm.slane %v831_v43, 1  ;;  %v617_v10 = vperm.slane %v831_v43, 2 }
 0x297   : > { %v554_v42 = vpack.c.bf16 %v545_v41, %v545_v41  ;;  %v546_v46 = vld [vmem:[%s408_s24] sm:$0xff] }
 0x29a   : > { %579 = vmatpush.bf16.msra.mxu0 %v848_v40 }
 0x29c   : > { %v1078_v52 = vpop.eup %1077 }
 0x29d   : > { %840 = vmatmul.msk.bf16.vlgmr.msra.gmra.mxu0 %vm568_vm5, %v554_v42  ;;  %v590_v53 = vmul.f32 32.0, %v1078_v52  ;;  %vm594_vm6 = vweird.f32 %v1078_v52 }
 0x29f   : > { %v591_v54 = vsub.f32 1.0, %v590_v53 }
 0x2a1   : > { %v592_v55 = vmul.f32 %v1078_v52, %v591_v54 }
 0x2a3   : > { %v593_v56 = vadd.f32 %v1078_v52, %v592_v55 }
 0x2a5   : > { %v595_v57 = vsel %vm594_vm6, %v1078_v52, %v593_v56 }
 0x31a   : > { %v581_v45 = vpop.f32.mrf.mxu0 }
 0x31b   : > { %v582_v47 = vadd.f32 %v581_v45, %v555_v44 }
 0x31d   : > { %v585_v48 = vadd.f32 %v582_v47, %v546_v46 }
 0x31f   : > { %v586_v49 = vsel %vm568_vm5, %v585_v48, 0.0 }
 0x320   : > { %587 = vadd.xlane.f32.xlu0 %v586_v49 }
 0x322   : > { %v583_v50 = vpop.f32.mrf.mxu0 }
 0x393   : > { %v588_v58 = vpop.xlane.xlu0 %587 }
 0x394   : > { %v596_v59 = vmul.f32 %v595_v57, %v588_v58 }
 0x396   : > { %v597_v60 = vsub.f32 %v585_v48, %v596_v59 }
 0x398   : > { %v598_v61 = vmul.f32 %v597_v60, %v597_v60 }
 0x39a   : > { %v599_v62 = vsel %vm568_vm5, %v598_v61, 0.0 }
 0x39b   : > { %600 = vadd.xlane.f32.xlu0 %v599_v62 }
 0x40e   : > { %v601_v63 = vpop.xlane.xlu0 %600 }
 0x40f   : > { %v602_v0 = vmul.f32 %v601_v63, %v595_v57 }
 0x411   : > { %v603_v1 = vadd.f32 1e-12, %v602_v0 }
 0x413   : > { %1079 = vrsqrt.f32 %v603_v1  ;;  %vm610_vm8 = vweird.f32 %v603_v1 }
 0x419   : > { %v1080_v2 = vpop.eup %1079 }
 0x41a   : > { %v605_v3 = vmul.f32 %v1080_v2, %v603_v1  ;;  %vm611_vm7 = vweird.f32 %v1080_v2 }
 0x41b   : > { %vm612_vm9 = vmor %vm610_vm8, %vm611_vm7 }
 0x41c   : > { %v606_v4 = vmul.f32 %v1080_v2, %v605_v3 }
 0x41e   : > { %v607_v5 = vmul.f32 0.5, %v606_v4 }
 0x420   : > { %v608_v6 = vsub.f32 1.5, %v607_v5 }
 0x422   : > { %v609_v7 = vmul.f32 %v1080_v2, %v608_v6 }
 0x424   : > { %v613_v9 = vsel %vm612_vm9, %v1080_v2, %v609_v7 }
 0x425   : > { %v614_v11 = vmul.f32 %v613_v9, %v597_v60 }
 0x427   : > { %v616_v12 = vmul.f32 %v615_v8, %v614_v11 }
 0x429   : > { %v618_v13 = vadd.f32 %v617_v10, %v616_v12 }
 0x42b   : > { %619 = vst.msk [vmem:[%s1995_s29] sm:$0xff] %vm568_vm5, %v618_v13 }
 0x42c PF: > { %s2227_s28 = sld [smem:[#allocation39_spill]]  ;;  %s635_s10 = sshll.u32 %s1995_s29, 4  ;;  %s636_s10 = int_to_ptr.vmem [resolvable:$true] %s635_s10 }
 0x42d   : > { %s2228_s6 = sld [smem:[#allocation38_spill]]  ;;  %s621_s17 = scalar_lea.sflag [#allocation8], %s455_s3 }
 0x42e   : > { %s2230_s0 = sld [smem:[#allocation40_spill]] }
 0x42f   : > { %s2231_s20 = sld [smem:[#allocation56_spill]] }
 0x432   : > { %s842_s2 = sshll.u32 %s2227_s28, 1 }
 0x433   : > { %s631_s30 = sadd.s32 %s2228_s6, %s842_s2 }
 0x434   : > { %s843_s24 = sshll.u32 %s631_s30, 3  ;;  %p2232_p11 = scmp.ne.s32.totalorder %s2230_s0, 0 }
 0x435   : > { %s633_s7 = scalar_lea.hbm %s2231_s20, %s843_s24  ;;  %s1287_s29 = scalar_lea.hbm %s2231_s20, 32 }
 0x436   : > { %s637_s11 = sshll.u32 %s633_s7, 4  ;;  %s638_s11 = int_to_ptr.hbm [resolvable:$true] %s637_s11 }
 0x437   : > { %s1281_s21 = sshra.s32 %s638_s11, 4  ;;  %s1282_s21 = int_to_ptr.hbm [resolvable:$true] %s1281_s21 }
 0x438   : > { %s1283_s27 = scalar_lea.hbm %s1282_s21, 8  ;;  %p1288_p1 = scmp.lt.s32.totalorder %s1282_s21, %s2231_s20 }
 0x439   : > { %p1284_p7 = scmp.ne.s32.totalorder %s1282_s21, %s1283_s27  ;;  %p1289_p5 = scmp.lt.s32.totalorder %s1287_s29, %s1283_s27 }
 0x43b   : > { %p1285_p6 = pnand %p1284_p7, %p2232_p11  ;;  %p1290_p0 = por %p1289_p5, %p1288_p1 }
 0x43d   : > { %p1286_p10 = pneg %p1285_p6 }
 0x43f   : > { %p1291_p8 = pnand %p1290_p0, %p1286_p10 }
 0x441   : > { %1294 = shalt.err (!%p1291_p8)
}
 0x442   : > { %870 = dma.vmem_to_hbm [thread:$0]  (%p2232_p11), %s636_s10, 128, %s638_s11, %s621_s17  }
 0x443 PF: > { %s2233_s3 = sld [smem:[#allocation31_spill]]  ;;  %p904_p13 = scmp.ge.s32.totalorder %s1479_s16, 2 }
 0x444   : > { %s2234_s18 = sld [smem:[#allocation41_spill]] }
 0x449   : > { %s649_s2 = sand.u32 1, %s2233_s3  }
 0x44a   : > { %p2235_p9 = scmp.ne.s32.totalorder %s2234_s18, 0  ;;  %s650_s30 = scalar_lea.sflag [#allocation8], %s649_s2 }
 0x44c   : > { %p898_p4 = pnand %p904_p13, %p2235_p9 }
 0x44e   : > { %p899_p3 = pneg %p898_p4 }
 0x450   : > { %1398 = dma.done.wait (%p899_p3), %s650_s30, 128  }
 0x451   : > { %1400 = vsyncadd (%p899_p3), %s650_s30, 4294967168  ;;  %s49_s16 = sadd.s32 1, %s1479_s16   ;;  %s2237_s0 = sld [smem:[#allocation32_spill]] }
 0x452   : > { %p2044_p12 = scmp.ge.s32.totalorder %s49_s16, 6   ;;  %s2238_s1 = sld [smem:[#allocation33_spill]] }
 0x453   : > { %s2239_s21 = sld [smem:[#allocation45_spill]]  ;;  %s2246_s5 = smov %s2260_s13 }
 0x454   : > { %s2240_s27 = sld [smem:[#allocation34_spill]]  ;;  %s2248_s2 = smov %s1419_s22 }
 0x455   : > { %s2241_s28 = sld [smem:[#allocation35_spill]]  ;;  %s2249_s22 = smov %s1423_s23 }
 0x456   : > { %s2242_s29 = sld [smem:[#allocation46_spill]]  ;;  %s2251_s23 = smov %s1917_s12 }
 0x457   : > { %s2243_s30 = sld [smem:[#allocation36_spill]]  ;;  %s2252_s24 = smov %s1431_s25 }
 0x458   : > { %s2244_s10 = sld [smem:[#allocation37_spill]]  ;;  %s2253_s25 = smov %s1435_s26 }
 0x459   : > { %s2245_s11 = sld [smem:[#allocation49_spill]]  ;;  %s2254_s26 = smov %s1857_s19 }
 0x45a   : > { %s2247_s7 = sld [smem:[#allocation43_spill]]  ;;  %s2255_s12 = smov %s1471_s14 }
 0x45b   : > { %s2256_s13 = smov %s1475_s15  ;;  %s2257_s14 = smov %s2246_s5 }
 0x45c   :  { %48 = sbr.rel (!%p2044_p12) target bundleno = 31 (0x1f), region = 140 }
 0x460   : > { %s2258_s15 = smov %s2247_s7 }
 0x461   :  { %656 = vsyncpa [#allocation7], 1 }
 0x462   :  { %658 = vsyncpa [#allocation7 + $0x1], 1 }
 0x463   :  { %659 = vsyncpa [#allocation10], 1 }
 0x464   :  { %661 = vsyncpa [#allocation10 + $0x1], 1 }
 0x465   :  { %662 = vsyncpa [#allocation13], 1 }
 0x466   :  { %664 = vsyncpa [#allocation13 + $0x1], 1 }
 0x467   :  { %665 = vsyncpa [#allocation8], 1 }
 0x468   :  { %667 = vsyncpa [#allocation8 + $0x1], 1 }

// kernel: tpu_custom_call.1
= control target key start
LH: loop header
LB: loop body
LE: loop exit
PB: predicated region body
PF: predicated region fallthrough
CT: control target
= control target key end

     0   :  { %s1481_s15 = smov [#allocation3]   ;;  %s1482_s16 = smov [#allocation4]   ;;  %s2109_s0 = inlined_call_operand.vmem [shape: s32[2], index: 0, kind: input, shape index: {}]   ;;  %s2110_s3 = inlined_call_operand.hbm [shape: f32[2,8,32], index: 3, kind: input, shape index: {}]   ;;  %s2111_s4 = inlined_call_operand.hbm [shape: f32[2,8,32], index: 4, kind: input, shape index: {}]   ;;  %s2112_s5 = inlined_call_operand.hbm [shape: f32[2,8,32], index: 5, kind: input, shape index: {}]   ;;  %s2113_s6 = inlined_call_operand.hbm [shape: f32[2,8,32], index: 6, kind: input, shape index: {}]   ;;  %s2114_s7 = inlined_call_operand.hbm [shape: bf16[2,32,32], index: 7, kind: input, shape index: {}]   ;;  %s2115_s8 = inlined_call_operand.vmem [shape: f32[2,3,32], index: 8, kind: input, shape index: {}]   ;;  %s2116_s9 = inlined_call_operand.hbm [shape: f32[2,16,32], index: 9, kind: output, shape index: {}]   ;;  %s2117_s1 = inlined_call_operand.vmem [shape: s32[2], index: 1, kind: input, shape index: {}]   ;;  %s2118_s2 = inlined_call_operand.vmem [shape: s32[2], index: 2, kind: input, shape index: {}]  }
   0x1   :  { %2147 = sst [smem:[#allocation50_spill]] %s2110_s3  ;;  %s15_s11 = sshll.u32 %s2109_s0, 4  ;;  %s16_s11 = int_to_ptr.vmem [resolvable:$true] %s15_s11 }
   0x2   :  { %2148 = sst [smem:[#allocation51_spill]] %s2111_s4  ;;  %s20_s14 = sshll.u32 %s2117_s1, 4  ;;  %s21_s14 = int_to_ptr.vmem [resolvable:$true] %s20_s14 }
   0x3   :  { %2149 = sst [smem:[#allocation52_spill]] %s2112_s5  ;;  %s25_s19 = sshll.u32 %s2118_s2, 4  ;;  %s26_s19 = int_to_ptr.vmem [resolvable:$true] %s25_s19 }
   0x4   :  { %2150 = sst [smem:[#allocation53_spill]] %s2113_s6  ;;  %s1483_s20 = smov [#allocation5]  }
   0x5   :  { %2151 = sst [smem:[#allocation54_spill]] %s2114_s7 }
   0x6   :  { %2152 = sst [smem:[#allocation55_spill]] %s2115_s8 }
   0x7   :  { %2153 = sst [smem:[#allocation56_spill]] %s2116_s9 }
   0x8   :  { %18 = dma.vmem_to_smem %s16_s11, 16, %s1481_s15, [#allocation2] }
   0x9   :  { %23 = dma.vmem_to_smem %s21_s14, 16, %s1482_s16, [#allocation2] }
   0xa   :  { %28 = dma.vmem_to_smem %s26_s19, 16, %s1483_s20, [#allocation2] }
   0xb   :  { %1375 = dma.done.wait [#allocation2], 48 }
   0xc   :  { %1376 = vsyncadd [#allocation2], 4294967248 }
   0xd   :  { %31 = sfence }
   0xe   :  { %32 = vsyncpa [#allocation7], 0 }
   0xf   :  { %34 = vsyncpa [#allocation7 + $0x1], 0 }
  0x10   :  { %35 = vsyncpa [#allocation10], 0 }
  0x11   :  { %37 = vsyncpa [#allocation10 + $0x1], 0 }
  0x12   :  { %38 = vsyncpa [#allocation13], 0 }
  0x13   :  { %40 = vsyncpa [#allocation13 + $0x1], 0 }
  0x14   :  { %41 = vsyncpa [#allocation8], 0 }
  0x15   :  { %43 = vsyncpa [#allocation8 + $0x1], 0  ;;  %s1548_s0 = smov 0   ;;  %s1550_s1 = smov 0  }
  0x16   :  { %s1552_s21 = smov 0   ;;  %s1554_s2 = smov 0  }
  0x17   :  { %s1556_s22 = smov 0   ;;  %s1558_s23 = smov 0  }
  0x18   :  { %s1560_s24 = smov 0   ;;  %s1562_s25 = smov 0  }
  0x19   :  { %s1564_s26 = smov 0   ;;  %s1566_s27 = smov 0  }
  0x1a   :  { %s1568_s28 = smov 0   ;;  %s1570_s29 = smov 0  }
  0x1b   :  { %s1572_s30 = smov 0   ;;  %s1574_s10 = smov 0  }
  0x1c   :  { %s1576_s11 = smov 0   ;;  %s1578_s12 = smov 0  }
  0x1d   :  { %s1580_s13 = smov 0   ;;  %s1582_s14 = smov 0  }
  0x1e   :  { %s1584_s15 = smov 0   ;;  %s1586_s16 = smov 0  }
  0x1f LB: > { %2154 = sst [smem:[#allocation31_spill]] %s1403_s0  ;;  %s1649_s17 = sadd.s32 4294967295, %s1479_s16   ;;  %s1479_s16 = sphi %s1586_s16, %s49_s16   ;;  %s1475_s15 = sphi %s1584_s15, %s2258_s15   ;;  %s1471_s14 = sphi %s1582_s14, %s2257_s14   ;;  %s1467_s13 = sphi %s1580_s13, %s2256_s13   ;;  %s1463_s12 = sphi %s1578_s12, %s2255_s12   ;;  %s1459_s11 = sphi %s1576_s11, %s2245_s11   ;;  %s1455_s10 = sphi %s1574_s10, %s2244_s10   ;;  %s1451_s30 = sphi %s1572_s30, %s2243_s30   ;;  %s1447_s29 = sphi %s1570_s29, %s2242_s29   ;;  %s1443_s28 = sphi %s1568_s28, %s2241_s28   ;;  %s1439_s27 = sphi %s1566_s27, %s2240_s27   ;;  %s1435_s26 = sphi %s1564_s26, %s2254_s26   ;;  %s1431_s25 = sphi %s1562_s25, %s2253_s25   ;;  %s1427_s24 = sphi %s1560_s24, %s2252_s24   ;;  %s1423_s23 = sphi %s1558_s23, %s2251_s23   ;;  %s1419_s22 = sphi %s1556_s22, %s2249_s22   ;;  %s1415_s2 = sphi %s1554_s2, %s2248_s2   ;;  %s1411_s21 = sphi %s1552_s21, %s2239_s21   ;;  %s1407_s1 = sphi %s1550_s1, %s2238_s1   ;;  %s1403_s0 = sphi %s1548_s0, %s2237_s0  }
  0x20   : > { %2155 = sst [smem:[#allocation32_spill]] %s1407_s1  ;;  %s801_s18 = sadd.s32 4294967294, %s1479_s16  }
  0x21   : > { %2156 = sst [smem:[#allocation33_spill]] %s1411_s21  ;;  %p2136_p0 = scmp.eq.s32.totalorder %s1649_s17, 0 }
  0x22   : > { %2157 = sst [smem:[#allocation34_spill]] %s1443_s28  ;;  %p242_p1 = scmp.ne.s32.totalorder %s1411_s21, %s1407_s1 }
  0x23   : > { %2158 = sst [smem:[#allocation35_spill]] %s1447_s29  ;;  %p243_p2 = scmp.eq.s32.totalorder %s1649_s17, 3 }
  0x24   : > { %2159 = sst [smem:[#allocation36_spill]] %s1455_s10  ;;  %p248_p3 = scmp.ne.s32.totalorder %s1407_s1, %s1403_s0 }
  0x25   : > { %2160 = sst [smem:[#allocation37_spill]] %s1459_s11  ;;  %p249_p4 = scmp.eq.s32.totalorder %s801_s18, 3 }
  0x26   : > { %2161 = sst [smem:[#allocation38_spill]] %s1463_s12  ;;  %p802_p5 = scmp.ge.s32.totalorder %s1479_s16, 1 }
  0x27   : > { %2162 = sst [smem:[#allocation39_spill]] %s1467_s13  ;;  %p1659_p6 = por %p243_p2, %p242_p1 }
  0x28   : > { %p256_p7 = scmp.lt.s32.totalorder %s1479_s16, 5  ;;  %p1664_p8 = por %p249_p4, %p248_p3 }
  0x29   : > { %s2163_s19 = scalar_select %p1659_p6, 1, 0 }
  0x2a   : > { %s2165_s20 = scalar_select %p1664_p8, 1, 0 }
  0x2b   : > { %2164 = sst [smem:[#allocation40_spill]] %s2163_s19  ;;  %p1668_p9 = pnand %p802_p5, %p256_p7 }
  0x2c   : > { %2166 = sst [smem:[#allocation41_spill]] %s2165_s20  ;;  %s1484_s19 = smov [#allocation14]  }
  0x2d   : > { %s2167_s9 = scalar_select %p1668_p9, 1, 0 }
  0x2e   : > { %s2169_s7 = sld [smem:[#allocation54_spill]]  ;;  %p872_p10 = pneg %p1668_p9 }
  0x2f   : > { %2168 = sst [smem:[#allocation42_spill]] %s2167_s9  ;;  %s269_s8 = sshll.u32 %s1484_s19, 4  ;;  %s270_s8 = int_to_ptr.vmem [resolvable:$true] %s269_s8 }
  0x30   : > { %p873_p11 = pnand %p872_p10, %p2136_p0  ;;  %s1485_s20 = smov 64  }
  0x31   : > { %s1486_s0 = smov 4   ;;  %s58_s13 = sadd.s32 1, %s1471_s14 }
  0x32   : > { %p59_p12 = scmp.ge.s32.totalorder %s58_s13, 2  ;;  %s95_s12 = sld [smem:[#allocation5 + %s1471_s14]] }
  0x33   : > { %p2139_p13 = scmp.eq.s32.totalorder %s1479_s16, 0  ;;  %s102_s1 = sadd.s32 1, %s1447_s29 }
  0x34   : > { %s267_s18 = sshll.u32 %s2169_s7, 4  ;;  %s61_s7 = sadd.s32 1, %s1475_s15  ;;  %s268_s18 = int_to_ptr.hbm [resolvable:$true] %s267_s18 }
  0x35   : > { %875 = dma.hbm_to_vmem [thread:$0]  (!%p873_p11), %s268_s18, 512, %s270_s8, [#allocation13], %s1485_s20, %s1485_s20, %s1486_s0  }
  0x36   : > { %s2260_s13 = smov (%p59_p12, %s58_s13), 0  ;;  %s2262_s7 = smov (!%p59_p12, %s61_s7), %s1475_s15 }
  0x37   : > { %s96_s19 = sld [smem:[#allocation5 + %s2260_s13]]  ;;  %p63_p1 = scmp.ge.s32.totalorder %s2262_s7, 2 }
  0x38   : > { %p115_p2 = scmp.ne.s32.totalorder %s1443_s28, %s1439_s27  ;;  %s228_s8 = ssub.s32 %s1471_s14, %s2260_s13 }
  0x39   : > { %s2264_s7 = smov (%p63_p1, %s2262_s7), 0  ;;  %p109_p3 = scmp.ne.s32.totalorder %s1447_s29, %s1443_s28 }
  0x3a   : > { %2170 = sst [smem:[#allocation43_spill]] %s2264_s7  ;;  %p1698_p4 = por %p115_p2, %p2136_p0 }
  0x3b   : > { %s1704_s18 = ssub.s32 %s1475_s15, %s2264_s7  ;;  %s232_s0 = sadd.s32 1, %s1411_s21 }
  0x3c   : > { %s2171_s20 = scalar_select %p1698_p4, 1, 0 }
  0x3d   : > { %s98_s27 = ssub.s32 %s95_s12, %s96_s19  ;;  %s229_s9 = sor.u32 %s228_s8, %s1704_s18 }
  0x3e   : > { %2172 = sst [smem:[#allocation44_spill]] %s2171_s20  ;;  %s99_s6 = sor.u32 %s98_s27, %s1704_s18 }
  0x3f   : > { %p230_p5 = scmp.eq.s32.totalorder %s229_s9, 0  ;;  %p100_p7 = scmp.eq.s32.totalorder %s99_s6, 0 }
  0x40   : > { %p111_p10 = por %p109_p3, %p2139_p13  ;;  %p2140_p11 = scmp.lt.s32.totalorder %s1479_s16, 4 }
  0x41   : > { %s1712_s28 = scalar_select %p230_p5, %s1411_s21, %s232_s0  }
  0x42   : > { %s1715_s20 = scalar_select %p100_p7, %s1447_s29, %s102_s1  }
  0x43   : > { %2173 = sst [smem:[#allocation45_spill]] %s1712_s28  ;;  %s309_s7 = sand.u32 1, %s1447_s29  }
  0x44   : > { %2174 = sst [smem:[#allocation46_spill]] %s1715_s20  ;;  %s807_s19 = sshll.u32 %s309_s7, 3 }
  0x45   : > { %p1722_p12 = pnand %p2140_p11, %p111_p10  ;;  %s311_s0 = scalar_lea.vmem [#allocation9], %s807_s19 }
  0x46   : > { %s855_s9 = scalar_select %p111_p10, [#allocation5], [#allocation17] }
  0x47   : > { %s856_s8 = scalar_select %p111_p10, %s1471_s14, 0 }
  0x48   : > { %s2266_s9 = smov (!%p2140_p11, %s855_s9), [#allocation21]  ;;  %s1731_s27 = sshll.u32 %s311_s0, 4 }
  0x49   : > { %s2268_s8 = smov (!%p2140_p11, %s856_s8), 0  ;;  %2176 = sst [smem:[#allocation47_spill]] %s1731_s27 }
  0x4a   : > { %s312_s1 = sld [smem:[%s2266_s9 + %s2268_s8]]  ;;  %p79_p1 = scmp.ne.s32.totalorder %s1459_s11, %s1455_s10 }
  0x4b   : > { %s1735_s7 = sld [smem:[#allocation4 + %s1471_s14]]  ;;  %p85_p2 = scmp.ne.s32.totalorder %s1455_s10, %s1451_s30 }
  0x4c   : > { %s1738_s12 = sld [smem:[#allocation4 + %s2260_s13]]  ;;  %s72_s28 = sadd.s32 1, %s1459_s11 }
  0x4d   : > { %s2177_s4 = sld [smem:[#allocation51_spill]]  ;;  %p1751_p3 = por %p2136_p0, %p85_p2 }
  0x4e   : > { %p1758_p5 = por %p2139_p13, %p79_p1  ;;  %s2181_s30 = sand.u32 1, %s1479_s16  }
  0x4f   : > { %s2178_s19 = scalar_select %p1751_p3, 1, 0 }
  0x50   : > { %s315_s20 = sadd.s32 %s1475_s15, %s312_s1  ;;  %p1151_p10 = pneg %p1722_p12 }
  0x51   : > { %s808_s29 = sshll.u32 %s315_s20, 3  ;;  %2179 = sst [smem:[#allocation48_spill]] %s2178_s19 }
  0x52   : > { %s1764_s20 = scalar_lea.sflag [#allocation10], %s2181_s30 }
  0x53   : > { %s317_s9 = scalar_lea.hbm %s2177_s4, %s808_s29 }
  0x54   : > { %s319_s8 = sshll.u32 %s317_s9, 4  ;;  %s1154_s9 = scalar_lea.hbm %s2177_s4, 16  ;;  %s320_s8 = int_to_ptr.hbm [resolvable:$true] %s319_s8 }
  0x55   : > { %s1147_s1 = sshra.s32 %s320_s8, 4  ;;  %s1148_s1 = int_to_ptr.hbm [resolvable:$true] %s1147_s1 }
  0x56   : > { %s1149_s5 = scalar_lea.hbm %s1148_s1, 8  ;;  %p1155_p1 = scmp.lt.s32.totalorder %s1148_s1, %s2177_s4 }
  0x57   : > { %p1150_p7 = scmp.ne.s32.totalorder %s1148_s1, %s1149_s5  ;;  %p1156_p13 = scmp.lt.s32.totalorder %s1154_s9, %s1149_s5 }
  0x59   : > { %p1152_p2 = pnand %p1151_p10, %p1150_p7  ;;  %p1157_p11 = por %p1156_p13, %p1155_p1 }
  0x5b   : > { %p1153_p0 = pneg %p1152_p2 }
  0x5d   : > { %p1158_p8 = pnand %p1157_p11, %p1153_p0 }
  0x5f   : > { %1161 = shalt.err (!%p1158_p8)
}
  0x60   : > { %s2182_s30 = sld [smem:[#allocation47_spill]]  ;;  %s68_s19 = ssub.s32 %s1735_s7, %s1738_s12 }
  0x61   : > { %s2184_s6 = sand.u32 1, %s1459_s11   ;;  %s69_s1 = sor.u32 %s68_s19, %s1704_s18 }
  0x62   : > { %s805_s0 = sshll.u32 %s2184_s6, 3  ;;  %p70_p0 = scmp.eq.s32.totalorder %s69_s1, 0 }
  0x63   : > { %s852_s5 = scalar_select %p1758_p5, [#allocation4], [#allocation16] }
  0x64   : > { %s1787_s21 = scalar_select %p70_p0, %s1459_s11, %s72_s28  }
  0x65   : > { %s853_s29 = scalar_select %p1758_p5, %s1471_s14, 0 }
  0x66   : > { %s2183_s10 = int_to_ptr.vmem [resolvable:$true] %s2182_s30  ;;  %2185 = sst [smem:[#allocation49_spill]] %s1787_s21 }
  0x67   : > { %886 = dma.hbm_to_vmem [thread:$0]  (!%p1722_p12), %s320_s8, 128, %s2183_s10, %s1764_s20  }
  0x68   : > { %p2186_p8 = scmp.lt.s32.totalorder %s1479_s16, 4  ;;  %s290_s10 = scalar_lea.vmem [#allocation6], %s805_s0 }
  0x69   : > { %s1796_s12 = sshll.u32 %s290_s10, 4  ;;  %s1808_s8 = sld [smem:[#allocation4 + %s1471_s14]] }
  0x6a   : > { %s2270_s5 = smov (!%p2186_p8, %s852_s5), [#allocation20]  ;;  %p2187_p13 = pmov %p2186_p8 }
  0x6b   : > { %2188 = sst [smem:[#allocation47_spill]] %s1796_s12  ;;  %p2189_p11 = pmov %p2186_p8 }
  0x6c   : > { %s2272_s29 = smov (!%p2187_p13, %s853_s29), 0  ;;  %s1811_s9 = sld [smem:[#allocation4 + %s2260_s13]] }
  0x6d   : > { %p1802_p12 = pnand %p2189_p11, %p1758_p5  ;;  %s291_s28 = sld [smem:[%s2270_s5 + %s2272_s29]] }
  0x6e   : > { %p139_p7 = scmp.ne.s32.totalorder %s1435_s26, %s1431_s25  ;;  %p145_p10 = scmp.ne.s32.totalorder %s1431_s25, %s1427_s24 }
  0x6f   : > { %p2191_p2 = scmp.eq.s32.totalorder %s1479_s16, 0  ;;  %s2193_s3 = sld [smem:[#allocation50_spill]] }
  0x70   : > { %p2194_p5 = scmp.eq.s32.totalorder %s1649_s17, 0  ;;  %s330_s10 = sand.u32 1, %s1435_s26  }
  0x71   : > { %p1820_p1 = por %p139_p7, %p2191_p2  ;;  %s2196_s24 = sand.u32 1, %s1459_s11  }
  0x72   : > { %p1829_p0 = por %p145_p10, %p2194_p5  ;;  %p1181_p13 = pneg %p1802_p12 }
  0x73   : > { %s294_s30 = sadd.s32 %s1475_s15, %s291_s28  ;;  %s1834_s28 = sshll.u32 %s330_s10, 3 }
  0x74   : > { %s806_s19 = sshll.u32 %s294_s30, 3  ;;  %s287_s30 = scalar_lea.sflag [#allocation7], %s2196_s24 }
  0x75   : > { %s296_s1 = scalar_lea.hbm %s2193_s3, %s806_s19  ;;  %s1184_s0 = scalar_lea.hbm %s2193_s3, 16 }
  0x76   : > { %s2195_s5 = scalar_select %p1829_p0, 1, 0 }
  0x77   : > { %s298_s29 = sshll.u32 %s296_s1, 4  ;;  %s299_s29 = int_to_ptr.hbm [resolvable:$true] %s298_s29 }
  0x78   : > { %s1177_s12 = sshra.s32 %s299_s29, 4  ;;  %s1178_s12 = int_to_ptr.hbm [resolvable:$true] %s1177_s12 }
  0x79   : > { %s1179_s4 = scalar_lea.hbm %s1178_s12, 8  ;;  %p1185_p10 = scmp.lt.s32.totalorder %s1178_s12, %s2193_s3 }
  0x7a   : > { %p1180_p8 = scmp.ne.s32.totalorder %s1178_s12, %s1179_s4  ;;  %p1186_p2 = scmp.lt.s32.totalorder %s1184_s0, %s1179_s4 }
  0x7c   : > { %p1182_p11 = pnand %p1181_p13, %p1180_p8  ;;  %p1187_p5 = por %p1186_p2, %p1185_p10 }
  0x7e   : > { %p1183_p7 = pneg %p1182_p11 }
  0x80   : > { %p1188_p6 = pnand %p1187_p5, %p1183_p7 }
  0x82   : > { %1191 = shalt.err (!%p1188_p6)
}
  0x83   : > { %s2197_s10 = sld [smem:[#allocation47_spill]]  ;;  %s128_s4 = ssub.s32 %s1808_s8, %s1811_s9 }
  0x84   : > { %s129_s21 = sor.u32 %s128_s4, %s1704_s18  ;;  %s132_s12 = sadd.s32 1, %s1435_s26 }
  0x85   : > { %p130_p6 = scmp.eq.s32.totalorder %s129_s21, 0  ;;  %p2199_p8 = scmp.lt.s32.totalorder %s1479_s16, 4 }
  0x86   : > { %s858_s7 = scalar_select %p1820_p1, [#allocation4], [#allocation18] }
  0x87   : > { %s1857_s19 = scalar_select %p130_p6, %s1435_s26, %s132_s12  }
  0x88   : > { %s859_s6 = scalar_select %p1820_p1, %s1471_s14, 0 }
  0x89   : > { %s2198_s24 = int_to_ptr.vmem [resolvable:$true] %s2197_s10  ;;  %s2274_s7 = smov (!%p2199_p8, %s858_s7), [#allocation22] }
  0x8a   : > { %881 = dma.hbm_to_vmem [thread:$0]  (!%p1802_p12), %s299_s29, 128, %s2198_s24, %s287_s30  }
  0x8b   : > { %p2200_p13 = pmov %p2199_p8  ;;  %p2201_p12 = pmov %p2199_p8 }
  0x8c   : > { %s1875_s29 = sld [smem:[#allocation5 + %s1471_s14]]  ;;  %s332_s30 = scalar_lea.vmem [#allocation11], %s1834_s28 }
  0x8d   : > { %s2276_s6 = smov (!%p2200_p13, %s859_s6), 0  ;;  %p1870_p11 = pnand %p2201_p12, %p1820_p1 }
  0x8e   : > { %s333_s9 = sld [smem:[%s2274_s7 + %s2276_s6]]  ;;  %s342_s0 = sshll.u32 %s332_s30, 4  ;;  %s343_s0 = int_to_ptr.vmem [resolvable:$true] %s342_s0 }
  0x8f   : > { %s156_s1 = sld [smem:[#allocation5 + %s2260_s13]]  ;;  %p169_p7 = scmp.ne.s32.totalorder %s1423_s23, %s1419_s22 }
  0x90   : > { %p175_p10 = scmp.ne.s32.totalorder %s1419_s22, %s1415_s2  ;;  %s2203_s21 = sld [smem:[#allocation52_spill]] }
  0x91   : > { %p2205_p1 = scmp.eq.s32.totalorder %s1649_s17, 0  ;;  %p2207_p5 = scmp.eq.s32.totalorder %s1479_s16, 0 }
  0x92   : > { %p1211_p13 = pneg %p1870_p11 }
  0x93   : > { %p1889_p2 = por %p175_p10, %p2205_p1  ;;  %p1895_p6 = por %p169_p7, %p2207_p5 }
  0x94   : > { %s336_s10 = sadd.s32 %s1475_s15, %s333_s9 }
  0x95   : > { %s810_s24 = sshll.u32 %s336_s10, 3  ;;  %s158_s2 = ssub.s32 %s1875_s29, %s156_s1 }
  0x96   : > { %s2204_s3 = smov %s2203_s21  ;;  %s338_s12 = scalar_lea.hbm %s2203_s21, %s810_s24 }
  0x97   : > { %s340_s7 = sshll.u32 %s338_s12, 4  ;;  %s1214_s24 = scalar_lea.hbm %s2204_s3, 16  ;;  %s341_s7 = int_to_ptr.hbm [resolvable:$true] %s340_s7 }
  0x98   : > { %s1207_s6 = sshra.s32 %s341_s7, 4  ;;  %s1208_s6 = int_to_ptr.hbm [resolvable:$true] %s1207_s6 }
  0x99   : > { %s1209_s9 = scalar_lea.hbm %s1208_s6, 8  ;;  %p1215_p7 = scmp.lt.s32.totalorder %s1208_s6, %s2204_s3 }
  0x9a   : > { %p1210_p8 = scmp.ne.s32.totalorder %s1208_s6, %s1209_s9  ;;  %p1216_p10 = scmp.lt.s32.totalorder %s1214_s24, %s1209_s9 }
  0x9c   : > { %p1212_p12 = pnand %p1211_p13, %p1210_p8  ;;  %p1217_p1 = por %p1216_p10, %p1215_p7 }
  0x9e   : > { %p1213_p0 = pneg %p1212_p12 }
  0xa0   : > { %p1218_p5 = pnand %p1217_p1, %p1213_p0 }
  0xa2   : > { %1221 = shalt.err (!%p1218_p5)
}
  0xa3   : > { %891 = dma.hbm_to_vmem [thread:$0]  (!%p1870_p11), %s341_s7, 128, %s343_s0, %s1764_s20  }
  0xa4   : > { %s159_s29 = sor.u32 %s158_s2, %s1704_s18  ;;  %s162_s1 = sadd.s32 1, %s1423_s23 }
  0xa5   : > { %p160_p0 = scmp.eq.s32.totalorder %s159_s29, 0  ;;  %s351_s21 = sand.u32 1, %s1423_s23  }
  0xa6   : > { %s861_s8 = scalar_select %p1895_p6, [#allocation5], [#allocation19] }
  0xa7   : > { %s1917_s12 = scalar_select %p160_p0, %s1423_s23, %s162_s1  }
  0xa8   : > { %s862_s6 = scalar_select %p1895_p6, %s1471_s14, 0 }
  0xa9   : > { %p2209_p8 = scmp.lt.s32.totalorder %s1479_s16, 4  ;;  %s811_s9 = sshll.u32 %s351_s21, 3 }
  0xaa   : > { %s353_s0 = scalar_lea.vmem [#allocation12], %s811_s9  ;;  %s2213_s4 = sld [smem:[#allocation53_spill]] }
  0xab   : > { %s2278_s8 = smov (!%p2209_p8, %s861_s8), [#allocation23]  ;;  %p2210_p13 = pmov %p2209_p8 }
  0xac   : > { %p2211_p12 = pmov %p2209_p8  ;;  %s363_s7 = sshll.u32 %s353_s0, 4  ;;  %s364_s7 = int_to_ptr.vmem [resolvable:$true] %s363_s7 }
  0xad   : > { %s2280_s6 = smov (!%p2210_p13, %s862_s6), 0  ;;  %s2214_s1 = sand.u32 1, %s1479_s16  }
  0xae   : > { %p1930_p7 = pnand %p2211_p12, %p1895_p6  ;;  %s354_s18 = sld [smem:[%s2278_s8 + %s2280_s6]] }
  0xaf   : > { %s350_s28 = scalar_lea.sflag [#allocation13], %s2214_s1 }
  0xb0   : > { %p1241_p6 = pneg %p1930_p7  ;;  %s1244_s9 = scalar_lea.hbm %s2213_s4, 16 }
  0xb4   : > { %s357_s2 = sadd.s32 %s1475_s15, %s354_s18 }
  0xb5   : > { %s812_s30 = sshll.u32 %s357_s2, 3 }
  0xb6   : > { %s359_s27 = scalar_lea.hbm %s2213_s4, %s812_s30 }
  0xb7   : > { %s361_s29 = sshll.u32 %s359_s27, 4  ;;  %s362_s29 = int_to_ptr.hbm [resolvable:$true] %s361_s29 }
  0xb8   : > { %s1237_s21 = sshra.s32 %s362_s29, 4  ;;  %s1238_s21 = int_to_ptr.hbm [resolvable:$true] %s1237_s21 }
  0xb9   : > { %s1239_s3 = scalar_lea.hbm %s1238_s21, 8  ;;  %p1245_p5 = scmp.lt.s32.totalorder %s1238_s21, %s2213_s4 }
  0xba   : > { %p1240_p11 = scmp.ne.s32.totalorder %s1238_s21, %s1239_s3  ;;  %p1246_p0 = scmp.lt.s32.totalorder %s1244_s9, %s1239_s3 }
  0xbc   : > { %p1242_p10 = pnand %p1241_p6, %p1240_p11  ;;  %p1247_p8 = por %p1246_p0, %p1245_p5 }
  0xbe   : > { %p1243_p1 = pneg %p1242_p10 }
  0xc0   : > { %p1248_p13 = pnand %p1247_p8, %p1243_p1 }
  0xc2   : > { %1251 = shalt.err (!%p1248_p13)
}
  0xc3   : > { %896 = dma.hbm_to_vmem [thread:$0]  (!%p1930_p7), %s362_s29, 128, %s364_s7, %s350_s28  }
  0xc4   : > { %372 = sbr.rel (%p1668_p9) target bundleno = 1091 (0x443), region = 44  ;;  %s2216_s30 = sld [smem:[#allocation36_spill]] (!%p1668_p9) }
  0xca   : > { %s374_s24 = sand.u32 1, %s2216_s30  }
  0xcb   : > { %s1953_s27 = sshll.u32 %s374_s24, 3  ;;  %s375_s1 = scalar_lea.sflag [#allocation7], %s374_s24 }
  0xcc   : > { %s378_s8 = scalar_lea.vmem [#allocation6], %s1953_s27 }
  0xcd   : > { %1378 = dma.done.wait (%p1751_p3), %s375_s1, 128  }
  0xce   : > { %1380 = vsyncadd (%p1751_p3), %s375_s1, 4294967168  ;;  %s2218_s3 = sld [smem:[#allocation34_spill]]  ;;  %s384_s7 = sand.u32 1, %s1649_s17  }
  0xcf   : > { %s385_s21 = scalar_lea.sflag [#allocation10], %s384_s7 }
  0xd4   : > { %s386_s29 = sand.u32 1, %s2218_s3  }
  0xd5   : > { %s1962_s28 = sshll.u32 %s386_s29, 3 }
  0xd6   : > { %s388_s6 = scalar_lea.vmem [#allocation9], %s1962_s28 }
  0xd7   : > { %1382 = dma.done.wait (%p1698_p4), %s385_s21, 128  }
  0xd8   : > { %1384 = vsyncadd (%p1698_p4), %s385_s21, 4294967168  ;;  %s396_s9 = sand.u32 1, %s1431_s25   ;;  %p2220_p9 = scmp.ne.s32.totalorder %s2195_s5, 0 }
  0xd9   : > { %s1970_s18 = sshll.u32 %s396_s9, 3 }
  0xda   : > { %s398_s0 = scalar_lea.vmem [#allocation11], %s1970_s18 }
  0xdb   : > { %1386 = dma.done.wait (%p2220_p9), %s385_s21, 128  }
  0xdc   : > { %1388 = vsyncadd (%p2220_p9), %s385_s21, 4294967168  ;;  %s406_s2 = sand.u32 1, %s1419_s22   ;;  %s405_s10 = scalar_lea.sflag [#allocation13], %s384_s7 }
  0xdd   : > { %s1978_s30 = sshll.u32 %s406_s2, 3 }
  0xde   : > { %s408_s24 = scalar_lea.vmem [#allocation12], %s1978_s30 }
  0xdf   : > { %1390 = dma.done.wait (%p1889_p2), %s405_s10, 128  }
  0xe0   : > { %1392 = vsyncadd (%p1889_p2), %s405_s10, 4294967168  ;;  %p2221_p4 = scmp.eq.s32.totalorder %s1649_s17, 0 }
  0xe2   : > { %1394 = dma.done.wait (%p2221_p4), [#allocation13], 512   ;;  %p2222_p3 = pmov %p2221_p4 }
  0xe3   : > { %s2223_s5 = sld [smem:[#allocation32_spill]] }
  0xe4   : > { %1396 = vsyncadd (%p2222_p3), [#allocation13], 4294966784  ;;  %s2224_s1 = sld [smem:[#allocation38_spill]] }
  0xe9   : > { %s455_s3 = sand.u32 1, %s2223_s5  }
  0xea   : > { %s1991_s20 = sld [smem:[#allocation3 + %s2224_s1]]  ;;  %s819_s7 = sshll.u32 %s455_s3, 3 }
  0xeb   : > { %s1995_s29 = scalar_lea.vmem [#allocation15], %s819_s7 }
  0xf0   : > { %p820_p12 = scmp.ne.s32.totalorder %s1991_s20, 0 }
  0xf1   : > { %s2225_s21 = sld [smem:[#allocation55_spill]] (!%p820_p12) }
  0xf2   : > { %467 = sbr.rel (%p820_p12) target bundleno = 654 (0x28e), region = 68 }
  0xf7   : > { %v847_v0 = vld [vmem:[#allocation14 + $0x8] sm:$0xff]  ;;  %v846_v1 = vld [vmem:[#allocation14] sm:$0xff]  ;;  %vm489_vm0 = vcmask 261120   ;;  %v1487_v12 = vmov 32.0  }
  0xf8   : > { %499 = vmatpush.bf16.msra.mxu0 %v847_v0  ;;  %v468_v2 = vld [vmem:[%s378_s8] sm:$0xff]  ;;  %1073 = vrcp.f32 %v1487_v12 }
  0xf9   : > { %v475_v3 = vpack.c.bf16 %v468_v2, %v468_v2  ;;  %v474_v4 = vld [vmem:[%s2225_s21] sm:$0x7] }
  0xfa   : > { %v476_v5 = vperm.slane %v474_v4, 0  ;;  %v469_v7 = vld [vmem:[%s398_s0] sm:$0xff]  ;;  %v536_v33 = vperm.slane %v474_v4, 1  ;;  %v538_v35 = vperm.slane %v474_v4, 2 }
  0xfc   : > { %500 = vmatpush.bf16.msra.mxu0 %v846_v1 }
  0xfe   : > { %v1074_v13 = vpop.eup %1073 }
  0xff   : > { %829 = vmatmul.msk.bf16.vlgmr.msra.gmra.mxu0 %vm489_vm0, %v475_v3  ;;  %v511_v14 = vmul.f32 32.0, %v1074_v13  ;;  %vm515_vm1 = vweird.f32 %v1074_v13 }
 0x101   : > { %v512_v15 = vsub.f32 1.0, %v511_v14 }
 0x103   : > { %v513_v16 = vmul.f32 %v1074_v13, %v512_v15 }
 0x105   : > { %v514_v17 = vadd.f32 %v1074_v13, %v513_v16 }
 0x107   : > { %v516_v18 = vsel %vm515_vm1, %v1074_v13, %v514_v17 }
 0x17c   : > { %v502_v6 = vpop.f32.mrf.mxu0 }
 0x17d   : > { %v503_v8 = vadd.f32 %v502_v6, %v476_v5 }
 0x17f   : > { %v506_v9 = vadd.f32 %v503_v8, %v469_v7 }
 0x181   : > { %v507_v10 = vsel %vm489_vm0, %v506_v9, 0.0 }
 0x182   : > { %508 = vadd.xlane.f32.xlu0 %v507_v10 }
 0x184   : > { %v504_v11 = vpop.f32.mrf.mxu0 }
 0x1f5   : > { %v509_v19 = vpop.xlane.xlu0 %508 }
 0x1f6   : > { %v517_v20 = vmul.f32 %v516_v18, %v509_v19 }
 0x1f8   : > { %v518_v21 = vsub.f32 %v506_v9, %v517_v20 }
 0x1fa   : > { %v519_v22 = vmul.f32 %v518_v21, %v518_v21 }
 0x1fc   : > { %v520_v23 = vsel %vm489_vm0, %v519_v22, 0.0 }
 0x1fd   : > { %521 = vadd.xlane.f32.xlu0 %v520_v23 }
 0x270   : > { %v522_v24 = vpop.xlane.xlu0 %521 }
 0x271   : > { %v523_v25 = vmul.f32 %v522_v24, %v516_v18 }
 0x273   : > { %v524_v26 = vadd.f32 1e-12, %v523_v25 }
 0x275   : > { %1075 = vrsqrt.f32 %v524_v26  ;;  %vm531_vm3 = vweird.f32 %v524_v26 }
 0x27b   : > { %v1076_v27 = vpop.eup %1075 }
 0x27c   : > { %v526_v28 = vmul.f32 %v1076_v27, %v524_v26  ;;  %vm532_vm2 = vweird.f32 %v1076_v27 }
 0x27d   : > { %vm533_vm4 = vmor %vm531_vm3, %vm532_vm2 }
 0x27e   : > { %v527_v29 = vmul.f32 %v1076_v27, %v526_v28 }
 0x280   : > { %v528_v30 = vmul.f32 0.5, %v527_v29 }
 0x282   : > { %v529_v31 = vsub.f32 1.5, %v528_v30 }
 0x284   : > { %v530_v32 = vmul.f32 %v1076_v27, %v529_v31 }
 0x286   : > { %v534_v34 = vsel %vm533_vm4, %v1076_v27, %v530_v32 }
 0x287   : > { %v535_v36 = vmul.f32 %v534_v34, %v518_v21 }
 0x289   : > { %v537_v37 = vmul.f32 %v536_v33, %v535_v36 }
 0x28b   : > { %v539_v38 = vadd.f32 %v538_v35, %v537_v37 }
 0x28d   : > { %540 = vst.msk [vmem:[%s1995_s29] sm:$0xff] %vm489_vm0, %v539_v38 }
 0x28e PF: > { %p830_p2 = scmp.eq.s32.totalorder %s1991_s20, 0 }
 0x28f   : > { %s2226_s9 = sld [smem:[#allocation55_spill]] (!%p830_p2) }
 0x290   : > { %544 = sbr.rel (%p830_p2) target bundleno = 1068 (0x42c), region = 72 }
 0x295   : > { %v849_v39 = vld [vmem:[#allocation14 + $0x18] sm:$0xff]  ;;  %v848_v40 = vld [vmem:[#allocation14 + $0x10] sm:$0xff]  ;;  %vm568_vm5 = vcmask 261120   ;;  %v831_v43 = vld [vmem:[%s2226_s9 + $0x4] sm:$0x7]  ;;  %v1488_v51 = vmov 32.0  }
 0x296   : > { %578 = vmatpush.bf16.msra.mxu0 %v849_v39  ;;  %v545_v41 = vld [vmem:[%s388_s6] sm:$0xff]  ;;  %v555_v44 = vperm.slane %v831_v43, 0  ;;  %1077 = vrcp.f32 %v1488_v51  ;;  %v615_v8 = vperm.slane %v831_v43, 1  ;;  %v617_v10 = vperm.slane %v831_v43, 2 }
 0x297   : > { %v554_v42 = vpack.c.bf16 %v545_v41, %v545_v41  ;;  %v546_v46 = vld [vmem:[%s408_s24] sm:$0xff] }
 0x29a   : > { %579 = vmatpush.bf16.msra.mxu0 %v848_v40 }
 0x29c   : > { %v1078_v52 = vpop.eup %1077 }
 0x29d   : > { %840 = vmatmul.msk.bf16.vlgmr.msra.gmra.mxu0 %vm568_vm5, %v554_v42  ;;  %v590_v53 = vmul.f32 32.0, %v1078_v52  ;;  %vm594_vm6 = vweird.f32 %v1078_v52 }
 0x29f   : > { %v591_v54 = vsub.f32 1.0, %v590_v53 }
 0x2a1   : > { %v592_v55 = vmul.f32 %v1078_v52, %v591_v54 }
 0x2a3   : > { %v593_v56 = vadd.f32 %v1078_v52, %v592_v55 }
 0x2a5   : > { %v595_v57 = vsel %vm594_vm6, %v1078_v52, %v593_v56 }
 0x31a   : > { %v581_v45 = vpop.f32.mrf.mxu0 }
 0x31b   : > { %v582_v47 = vadd.f32 %v581_v45, %v555_v44 }
 0x31d   : > { %v585_v48 = vadd.f32 %v582_v47, %v546_v46 }
 0x31f   : > { %v586_v49 = vsel %vm568_vm5, %v585_v48, 0.0 }
 0x320   : > { %587 = vadd.xlane.f32.xlu0 %v586_v49 }
 0x322   : > { %v583_v50 = vpop.f32.mrf.mxu0 }
 0x393   : > { %v588_v58 = vpop.xlane.xlu0 %587 }
 0x394   : > { %v596_v59 = vmul.f32 %v595_v57, %v588_v58 }
 0x396   : > { %v597_v60 = vsub.f32 %v585_v48, %v596_v59 }
 0x398   : > { %v598_v61 = vmul.f32 %v597_v60, %v597_v60 }
 0x39a   : > { %v599_v62 = vsel %vm568_vm5, %v598_v61, 0.0 }
 0x39b   : > { %600 = vadd.xlane.f32.xlu0 %v599_v62 }
 0x40e   : > { %v601_v63 = vpop.xlane.xlu0 %600 }
 0x40f   : > { %v602_v0 = vmul.f32 %v601_v63, %v595_v57 }
 0x411   : > { %v603_v1 = vadd.f32 1e-12, %v602_v0 }
 0x413   : > { %1079 = vrsqrt.f32 %v603_v1  ;;  %vm610_vm8 = vweird.f32 %v603_v1 }
 0x419   : > { %v1080_v2 = vpop.eup %1079 }
 0x41a   : > { %v605_v3 = vmul.f32 %v1080_v2, %v603_v1  ;;  %vm611_vm7 = vweird.f32 %v1080_v2 }
 0x41b   : > { %vm612_vm9 = vmor %vm610_vm8, %vm611_vm7 }
 0x41c   : > { %v606_v4 = vmul.f32 %v1080_v2, %v605_v3 }
 0x41e   : > { %v607_v5 = vmul.f32 0.5, %v606_v4 }
 0x420   : > { %v608_v6 = vsub.f32 1.5, %v607_v5 }
 0x422   : > { %v609_v7 = vmul.f32 %v1080_v2, %v608_v6 }
 0x424   : > { %v613_v9 = vsel %vm612_vm9, %v1080_v2, %v609_v7 }
 0x425   : > { %v614_v11 = vmul.f32 %v613_v9, %v597_v60 }
 0x427   : > { %v616_v12 = vmul.f32 %v615_v8, %v614_v11 }
 0x429   : > { %v618_v13 = vadd.f32 %v617_v10, %v616_v12 }
 0x42b   : > { %619 = vst.msk [vmem:[%s1995_s29] sm:$0xff] %vm568_vm5, %v618_v13 }
 0x42c PF: > { %s2227_s28 = sld [smem:[#allocation39_spill]]  ;;  %s635_s10 = sshll.u32 %s1995_s29, 4  ;;  %s636_s10 = int_to_ptr.vmem [resolvable:$true] %s635_s10 }
 0x42d   : > { %s2228_s6 = sld [smem:[#allocation38_spill]]  ;;  %s621_s17 = scalar_lea.sflag [#allocation8], %s455_s3 }
 0x42e   : > { %s2230_s0 = sld [smem:[#allocation40_spill]] }
 0x42f   : > { %s2231_s20 = sld [smem:[#allocation56_spill]] }
 0x432   : > { %s842_s2 = sshll.u32 %s2227_s28, 1 }
 0x433   : > { %s631_s30 = sadd.s32 %s2228_s6, %s842_s2 }
 0x434   : > { %s843_s24 = sshll.u32 %s631_s30, 3  ;;  %p2232_p11 = scmp.ne.s32.totalorder %s2230_s0, 0 }
 0x435   : > { %s633_s7 = scalar_lea.hbm %s2231_s20, %s843_s24  ;;  %s1287_s29 = scalar_lea.hbm %s2231_s20, 32 }
 0x436   : > { %s637_s11 = sshll.u32 %s633_s7, 4  ;;  %s638_s11 = int_to_ptr.hbm [resolvable:$true] %s637_s11 }
 0x437   : > { %s1281_s21 = sshra.s32 %s638_s11, 4  ;;  %s1282_s21 = int_to_ptr.hbm [resolvable:$true] %s1281_s21 }
 0x438   : > { %s1283_s27 = scalar_lea.hbm %s1282_s21, 8  ;;  %p1288_p1 = scmp.lt.s32.totalorder %s1282_s21, %s2231_s20 }
 0x439   : > { %p1284_p7 = scmp.ne.s32.totalorder %s1282_s21, %s1283_s27  ;;  %p1289_p5 = scmp.lt.s32.totalorder %s1287_s29, %s1283_s27 }
 0x43b   : > { %p1285_p6 = pnand %p1284_p7, %p2232_p11  ;;  %p1290_p0 = por %p1289_p5, %p1288_p1 }
 0x43d   : > { %p1286_p10 = pneg %p1285_p6 }
 0x43f   : > { %p1291_p8 = pnand %p1290_p0, %p1286_p10 }
 0x441   : > { %1294 = shalt.err (!%p1291_p8)
}
 0x442   : > { %870 = dma.vmem_to_hbm [thread:$0]  (%p2232_p11), %s636_s10, 128, %s638_s11, %s621_s17  }
 0x443 PF: > { %s2233_s3 = sld [smem:[#allocation31_spill]]  ;;  %p904_p13 = scmp.ge.s32.totalorder %s1479_s16, 2 }
 0x444   : > { %s2234_s18 = sld [smem:[#allocation41_spill]] }
 0x449   : > { %s649_s2 = sand.u32 1, %s2233_s3  }
 0x44a   : > { %p2235_p9 = scmp.ne.s32.totalorder %s2234_s18, 0  ;;  %s650_s30 = scalar_lea.sflag [#allocation8], %s649_s2 }
 0x44c   : > { %p898_p4 = pnand %p904_p13, %p2235_p9 }
 0x44e   : > { %p899_p3 = pneg %p898_p4 }
 0x450   : > { %1398 = dma.done.wait (%p899_p3), %s650_s30, 128  }
 0x451   : > { %1400 = vsyncadd (%p899_p3), %s650_s30, 4294967168  ;;  %s49_s16 = sadd.s32 1, %s1479_s16   ;;  %s2237_s0 = sld [smem:[#allocation32_spill]] }
 0x452   : > { %p2044_p12 = scmp.ge.s32.totalorder %s49_s16, 6   ;;  %s2238_s1 = sld [smem:[#allocation33_spill]] }
 0x453   : > { %s2239_s21 = sld [smem:[#allocation45_spill]]  ;;  %s2246_s5 = smov %s2260_s13 }
 0x454   : > { %s2240_s27 = sld [smem:[#allocation34_spill]]  ;;  %s2248_s2 = smov %s1419_s22 }
 0x455   : > { %s2241_s28 = sld [smem:[#allocation35_spill]]  ;;  %s2249_s22 = smov %s1423_s23 }
 0x456   : > { %s2242_s29 = sld [smem:[#allocation46_spill]]  ;;  %s2251_s23 = smov %s1917_s12 }
 0x457   : > { %s2243_s30 = sld [smem:[#allocation36_spill]]  ;;  %s2252_s24 = smov %s1431_s25 }
 0x458   : > { %s2244_s10 = sld [smem:[#allocation37_spill]]  ;;  %s2253_s25 = smov %s1435_s26 }
 0x459   : > { %s2245_s11 = sld [smem:[#allocation49_spill]]  ;;  %s2254_s26 = smov %s1857_s19 }
 0x45a   : > { %s2247_s7 = sld [smem:[#allocation43_spill]]  ;;  %s2255_s12 = smov %s1471_s14 }
 0x45b   : > { %s2256_s13 = smov %s1475_s15  ;;  %s2257_s14 = smov %s2246_s5 }
 0x45c   :  { %48 = sbr.rel (!%p2044_p12) target bundleno = 31 (0x1f), region = 140 }
 0x460   : > { %s2258_s15 = smov %s2247_s7 }
 0x461   :  { %656 = vsyncpa [#allocation7], 1 }
 0x462   :  { %658 = vsyncpa [#allocation7 + $0x1], 1 }
 0x463   :  { %659 = vsyncpa [#allocation10], 1 }
 0x464   :  { %661 = vsyncpa [#allocation10 + $0x1], 1 }
 0x465   :  { %662 = vsyncpa [#allocation13], 1 }
 0x466   :  { %664 = vsyncpa [#allocation13 + $0x1], 1 }
 0x467   :  { %665 = vsyncpa [#allocation8], 1 }
 0x468   :  { %667 = vsyncpa [#allocation8 + $0x1], 1 }

</bundles_post_ra>
